<compile_context>
chip_gen: v5e
topology: v5e:2x2
jax: 0.10.0
libtpu: 0.0.40
codegen_flags: <defaults>
</compile_context>

<pallas_src>
import jax
import jax.numpy as jnp
from jax.experimental import pallas as pl
from jax.experimental.pallas import tpu as pltpu

# ---- model hyper-params (small synthetic BERT, lane-dense) --------------------
B, S, H = 2, 8, 128         # batch, seq len, hidden size (H = 128 lanes)
NH, DH = 4, 32              # heads, head dim (NH*DH == H)
FF = 256                    # FFN intermediate size (multiple of 128)
NUM_LAYERS = 2
VOCAB = 64
MAX_POS = 16
MASK_TOKEN_ID = 4           # synthetic tokenizer.mask_token_id
LN_EPS = 1e-12              # BERT LayerNorm eps


# ---- in-kernel helpers --------------------------------------------------------
def _layernorm(x, g, b):
    # Single-pass stats (mean, mean-of-squares): one cross-lane reduction chain
    # instead of the dependent mean -> center -> square -> mean chain.
    m = jnp.mean(x, axis=-1, keepdims=True)
    m2 = jnp.mean(x * x, axis=-1, keepdims=True)
    var = jnp.maximum(m2 - m * m, 0.0)
    return (x - m) * jax.lax.rsqrt(var + LN_EPS) * g + b


# ---- the fused encoder kernel (one grid step == one layer of one batch block) -
def fused_encoder_kernel(emb_ref,    # (BTB, S, H)     summed embeddings (f32)
                         bias_ref,   # (NH, BTB, 1, S) additive attn bias (f32)
                         pool_ref,   # (BTB, 1, S)     per-example pooling weights
                         embln_ref,  # (2, H)          embedding LN gamma/beta
                         qkvw_ref,   # (1, H, 3H)      fused QKV weight (bf16)
                         qkvb_ref,   # (1, 1, 3H)      fused QKV bias (f32)
                         wo_ref,     # (1, H, H)       fused output proj (bf16)
                         w1_ref,     # (1, H, FF)      FFN in (bf16)
                         w2_ref,     # (1, FF, H)      FFN out (bf16)
                         vech_ref,   # (1, 6, H)       [bo, ln1_g, ln1_b, bf2, ln2_g, ln2_b]
                         vecff_ref,  # (1, 1, FF)      bf1
                         out_ref,    # (BTB, 1, H)     pooled outputs
                         h_ref):     # scratch (BTB*S, H) f32, carried over layers
    l = pl.program_id(1)
    btb, sn, hn = emb_ref.shape
    ntok = btb * sn
    scale = 1.0 / (DH ** 0.5)

    # Embedding LayerNorm only on the first layer step of each batch block.
    @pl.when(l == 0)
    def _():
        eln = embln_ref[...]                                    # (2, H)
        h_ref[...] = _layernorm(emb_ref[...].reshape(ntok, hn),
                                eln[0:1], eln[1:2])

    h = h_ref[...]                                              # (ntok, H) f32

    qkvw = qkvw_ref[0]                                          # (H, 3H) bf16
    qkvb = qkvb_ref[0]                                          # (1, 3H) f32
    wol = wo_ref[0]                                             # (H, H)  bf16
    w1l = w1_ref[0]                                             # (H, FF) bf16
    w2l = w2_ref[0]                                             # (FF, H) bf16
    vh = vech_ref[0]                                            # (6, H)  f32
    bf1 = vecff_ref[0]                                          # (1, FF) f32
    bo, g1, be1 = vh[0:1], vh[1:2], vh[2:3]
    bf2, g2, be2 = vh[3:4], vh[4:5], vh[5:6]

    # Fused QKV projection: bf16 MXU inputs, fp32 accumulation.
    qkv = jnp.dot(h.astype(jnp.bfloat16), qkvw,
                  preferred_element_type=jnp.float32) + qkvb    # (ntok, 3H)

    # Fold heads into a merged (NH*btb) leading batch dim so scores/context are
    # single batched einsums (head-major ordering n*btb + b).
    # TODO(synk): per-head lane slices (32-lane offsets) keep Mosaic lowering
    # robust; a minor-dim (ntok,H)->(b,s,NH,DH) reshape would avoid the
    # lane-shift relayout entirely if supported.
    def split_heads(off):
        return jnp.concatenate(
            [qkv[:, off + n * DH: off + (n + 1) * DH].reshape(btb, sn, DH)
             for n in range(NH)], axis=0).astype(jnp.bfloat16)  # (NH*btb, sn, DH)

    q_h = split_heads(0)
    k_h = split_heads(hn)
    v_h = split_heads(2 * hn)

    # Attention-mask bias was pre-broadcast over heads in the wrapper (hoisted).
    bias_m = bias_ref[...].reshape(NH * btb, 1, sn)             # (NH*btb, 1, S)

    s = jnp.einsum('bqd,bkd->bqk', q_h, k_h,
                   preferred_element_type=jnp.float32) * scale + bias_m
    s = s - jnp.max(s, axis=-1, keepdims=True)
    p = jnp.exp(s)
    p = p * pl.reciprocal(jnp.sum(p, axis=-1, keepdims=True), approx=True)

    ctx = jnp.einsum('bqk,bkd->bqd', p.astype(jnp.bfloat16), v_h,
                     preferred_element_type=jnp.float32)        # (NH*btb, sn, DH)

    # Re-pack heads onto lanes -> (ntok, H), then ONE fused output projection.
    ctx_r = ctx.reshape(NH, ntok, DH)
    ctx_full = jnp.concatenate([ctx_r[n] for n in range(NH)], axis=-1)  # (ntok, H)
    attn = jnp.dot(ctx_full.astype(jnp.bfloat16), wol,
                   preferred_element_type=jnp.float32) + bo

    h1 = _layernorm(h + attn, g1, be1)

    inter = jnp.dot(h1.astype(jnp.bfloat16), w1l,
                    preferred_element_type=jnp.float32) + bf1
    # TODO(synk): HF BERT uses exact erf-GELU; tanh-approx GELU used for robust Mosaic lowering.
    inter = jax.nn.gelu(inter, approximate=True)
    ffn = jnp.dot(inter.astype(jnp.bfloat16), w2l,
                  preferred_element_type=jnp.float32) + bf2
    new_h = _layernorm(h1 + ffn, g2, be2)
    h_ref[...] = new_h                                          # carry to next layer

    # Pooling epilogue on the last layer step: out[b] = sum_s pool[b,s] * h[b,s,:]
    # ('prompt' one-hot at [MASK], 'cls' one-hot at 0, 'avg'/label mean = 1/S).
    @pl.when(l == pl.num_programs(1) - 1)
    def _():
        h3 = new_h.reshape(btb, sn, hn)
        out_ref[...] = jnp.einsum('bqs,bsh->bqh', pool_ref[...], h3,
                                  preferred_element_type=jnp.float32)


# ---- pallas_call wrapper ------------------------------------------------------
def fused_encoder(emb, attn_bias4, pool_w3, params):
    BT, Sn, Hn = emb.shape
    L = params['qkv_w'].shape[0]
    FFn = params['w1'].shape[-1]
    NB = 2 if BT % 2 == 0 else 1          # batch blocks ('parallel' axis; 2 TCs on v7x)
    BTB = BT // NB

    in_specs = [
        pl.BlockSpec((BTB, Sn, Hn), lambda b, l: (b, 0, 0)),          # emb
        pl.BlockSpec((NH, BTB, 1, Sn), lambda b, l: (0, b, 0, 0)),    # attn bias
        pl.BlockSpec((BTB, 1, Sn), lambda b, l: (b, 0, 0)),           # pool weights
        pl.BlockSpec((2, Hn), lambda b, l: (0, 0)),                   # emb_ln
        pl.BlockSpec((1, Hn, 3 * Hn), lambda b, l: (l, 0, 0)),        # qkv_w (bf16)
        pl.BlockSpec((1, 1, 3 * Hn), lambda b, l: (l, 0, 0)),         # qkv_b
        pl.BlockSpec((1, Hn, Hn), lambda b, l: (l, 0, 0)),            # wo (bf16)
        pl.BlockSpec((1, Hn, FFn), lambda b, l: (l, 0, 0)),           # w1 (bf16)
        pl.BlockSpec((1, FFn, Hn), lambda b, l: (l, 0, 0)),           # w2 (bf16)
        pl.BlockSpec((1, 6, Hn), lambda b, l: (l, 0, 0)),             # vec_h
        pl.BlockSpec((1, 1, FFn), lambda b, l: (l, 0, 0)),            # vec_ff
    ]
    out_specs = pl.BlockSpec((BTB, 1, Hn), lambda b, l: (b, 0, 0))

    out = pl.pallas_call(
        fused_encoder_kernel,
        out_shape=jax.ShapeDtypeStruct((BT, 1, Hn), jnp.float32),
        grid_spec=pltpu.PrefetchScalarGridSpec(
            num_scalar_prefetch=0,
            grid=(NB, L),
            in_specs=in_specs,
            out_specs=out_specs,
            scratch_shapes=[pltpu.VMEM((BTB * Sn, Hn), jnp.float32)]),
        compiler_params=pltpu.CompilerParams(
            dimension_semantics=("parallel", "arbitrary")),
    )(emb, attn_bias4, pool_w3,
      params['emb_ln'], params['qkv_w'], params['qkv_b'],
      params['wo'], params['w1'], params['w2'],
      params['vec_h'], params['vec_ff'])
    return out.reshape(BT, Hn)


# ---- EMBED_BERT.forward equivalent --------------------------------------------
def embed_bert_forward(params, input_ids, attention_mask,
                       label_ids, label_mask, pool='prompt'):
    """Equivalent of EMBED_BERT.forward → (predictions, label_outputs)."""
    Bn, Sn = input_ids.shape

    # Merge the sentence batch and the label batch: one encoder pass total.
    ids = jnp.concatenate([input_ids, label_ids], axis=0)            # (2B, S)
    mask = jnp.concatenate([attention_mask, label_mask], axis=0)

    # Embedding-table gather (word + position + token-type) stays in plain JAX.
    emb = (params['word_emb'][ids]
           + params['pos_emb'][:Sn][None, :, :]
           + params['type_emb'][jnp.zeros_like(ids)])
    # HF-style additive attention bias, pre-broadcast over heads (hoisted once).
    bias = ((1.0 - mask.astype(jnp.float32)) * -10000.0)[:, None, :]  # (2B,1,S)
    bias4 = jnp.broadcast_to(bias[None], (NH,) + bias.shape)          # (NH,2B,1,S)

    # Pooling weights: sentences pooled per `pool`, labels always mean-pooled.
    if pool == 'prompt':
        # torch.where(input_ids == mask_token_id)[1]; argmax picks the first
        # [MASK] per example (returns 0 if none present — semantic difference).
        mask_idx = jnp.argmax((input_ids == MASK_TOKEN_ID).astype(jnp.int32),
                              axis=1).astype(jnp.int32)
        sent_pool = jax.nn.one_hot(mask_idx, Sn, dtype=jnp.float32)
    elif pool == 'cls':
        sent_pool = jax.nn.one_hot(jnp.zeros((Bn,), jnp.int32), Sn,
                                   dtype=jnp.float32)
    else:  # 'avg'
        sent_pool = jnp.full((Bn, Sn), 1.0 / Sn, jnp.float32)
    # Labels: plain mean over seq (matches torch .mean(dim=1); pads included).
    label_pool = jnp.full((Bn, Sn), 1.0 / Sn, jnp.float32)
    pool_w = jnp.concatenate([sent_pool, label_pool], axis=0)[:, None, :]  # (2B,1,S)

    pooled = fused_encoder(emb, bias4, pool_w, params)               # (2B, H)
    predictions, label_outputs = pooled[:Bn], pooled[Bn:]
    return predictions, label_outputs


# ---- deterministic synthetic parameter init (packed per-layer slabs) ----------
def init_params(key):
    keys = iter(jax.random.split(key, 3 + NUM_LAYERS * 4))
    rnd = lambda shape: jax.random.normal(next(keys), shape, jnp.float32) * 0.02

    qkv_w, wo_w, w1_w, w2_w = [], [], [], []
    for _ in range(NUM_LAYERS):
        qkv_w.append(rnd((H, 3 * H)))              # [Wq | Wk | Wv]
        wo_w.append(rnd((NH, DH, H)).reshape(H, H))  # head-major rows -> fused (H,H)
        w1_w.append(rnd((H, FF)))
        w2_w.append(rnd((FF, H)))

    zero_h = jnp.zeros((H,), jnp.float32)
    one_h = jnp.ones((H,), jnp.float32)
    # per-layer H-sized vectors: [bo, ln1_g, ln1_b, bf2, ln2_g, ln2_b]
    vec_h_layer = jnp.stack([zero_h, one_h, zero_h, zero_h, one_h, zero_h])
    vec_h = jnp.tile(vec_h_layer[None], (NUM_LAYERS, 1, 1))           # (L, 6, H)

    return dict(
        word_emb=rnd((VOCAB, H)),
        pos_emb=rnd((MAX_POS, H)),
        type_emb=rnd((2, H)),
        emb_ln=jnp.stack([one_h, zero_h]),                            # (2, H)
        qkv_w=jnp.stack(qkv_w).astype(jnp.bfloat16),                  # (L, H, 3H)
        qkv_b=jnp.zeros((NUM_LAYERS, 1, 3 * H), jnp.float32),
        wo=jnp.stack(wo_w).astype(jnp.bfloat16),                      # (L, H, H)
        w1=jnp.stack(w1_w).astype(jnp.bfloat16),                      # (L, H, FF)
        w2=jnp.stack(w2_w).astype(jnp.bfloat16),                      # (L, FF, H)
        vec_h=vec_h,                                                  # (L, 6, H)
        vec_ff=jnp.zeros((NUM_LAYERS, 1, FF), jnp.float32),
    )


if __name__ == "__main__":
    key = jax.random.PRNGKey(0)
    pkey, ikey, lkey = jax.random.split(key, 3)
    params = init_params(pkey)

    # Synthetic "tokenized" prompted sentences: [CLS]=1 ... [MASK]=4 ... [SEP]=2
    # (the HF tokenizer itself has no Pallas/JAX equivalent).
    input_ids = jax.random.randint(ikey, (B, S), 5, VOCAB, dtype=jnp.int32)
    input_ids = input_ids.at[:, 0].set(1)
    input_ids = input_ids.at[:, 3].set(MASK_TOKEN_ID)
    input_ids = input_ids.at[:, S - 1].set(2)
    attention_mask = jnp.ones((B, S), jnp.int32)

    label_ids = jax.random.randint(lkey, (B, S), 5, VOCAB, dtype=jnp.int32)
    label_ids = label_ids.at[:, 0].set(1)
    label_mask = jnp.ones((B, S), jnp.int32).at[1, S - 2:].set(0)   # some padding
    label_ids = jnp.where(label_mask == 1, label_ids, 0)

    forward = jax.jit(embed_bert_forward, static_argnames=('pool',))
    predictions, label_outputs = forward(
        params, input_ids, attention_mask, label_ids, label_mask, pool='prompt')
    jax.block_until_ready((predictions, label_outputs))

    assert predictions.shape == (B, H) and predictions.dtype == jnp.float32
    assert label_outputs.shape == (B, H) and label_outputs.dtype == jnp.float32
    assert bool(jnp.all(jnp.isfinite(predictions))) and bool(jnp.all(jnp.isfinite(label_outputs)))
    print("KERNEL_OK")
</pallas_src>

<mosaic_0001>
module attributes {stable_mosaic.version = 11 : i64} {
  func.func @fused_encoder_kernel(%arg0: i32, %arg1: i32, %arg2: memref<2x8x128xf32, #tpu.memory_space<vmem>>, %arg3: memref<4x2x1x8xf32, #tpu.memory_space<vmem>>, %arg4: memref<2x1x8xf32, #tpu.memory_space<vmem>>, %arg5: memref<2x128xf32, #tpu.memory_space<vmem>>, %arg6: memref<1x128x384xbf16, #tpu.memory_space<vmem>>, %arg7: memref<1x1x384xf32, #tpu.memory_space<vmem>>, %arg8: memref<1x128x128xbf16, #tpu.memory_space<vmem>>, %arg9: memref<1x128x256xbf16, #tpu.memory_space<vmem>>, %arg10: memref<1x256x128xbf16, #tpu.memory_space<vmem>>, %arg11: memref<1x6x128xf32, #tpu.memory_space<vmem>>, %arg12: memref<1x1x256xf32, #tpu.memory_space<vmem>>, %arg13: memref<2x1x128xf32, #tpu.memory_space<vmem>>, %arg14: memref<16x128xf32, #tpu.memory_space<vmem>>) attributes {dimension_semantics = [#tpu.dimension_semantics<parallel>, #tpu.dimension_semantics<arbitrary>], iteration_bounds = array<i64: 2, 2>, scalar_prefetch = 0 : i64, scratch_operands = 1 : i64, tpu.core_type = #tpu.core_type<tc>, window_params = [{transform_indices = @transform_0, window_bounds = array<i64: 2, 8, 128>}, {transform_indices = @transform_1, window_bounds = array<i64: 4, 2, 1, 8>}, {transform_indices = @transform_2, window_bounds = array<i64: 2, 1, 8>}, {pipeline_mode = #tpu.pipeline_mode<synchronous>, transform_indices = @transform_3, window_bounds = array<i64: 2, 128>}, {transform_indices = @transform_4, window_bounds = array<i64: 1, 128, 384>}, {transform_indices = @transform_5, window_bounds = array<i64: 1, 1, 384>}, {transform_indices = @transform_6, window_bounds = array<i64: 1, 128, 128>}, {transform_indices = @transform_7, window_bounds = array<i64: 1, 128, 256>}, {transform_indices = @transform_8, window_bounds = array<i64: 1, 256, 128>}, {transform_indices = @transform_9, window_bounds = array<i64: 1, 6, 128>}, {transform_indices = @transform_10, window_bounds = array<i64: 1, 1, 256>}, {transform_indices = @transform_11, window_bounds = array<i64: 2, 1, 128>}]} {
    %c0_i32 = arith.constant 0 : i32
    %0 = arith.cmpi eq, %arg1, %c0_i32 : i32
    %1 = arith.extui %0 : i1 to i32
    %c0_i32_0 = arith.constant 0 : i32
    %2 = arith.cmpi ne, %1, %c0_i32_0 : i32
    scf.if %2 {
      %c0_54 = arith.constant 0 : index
      %c0_55 = arith.constant 0 : index
      %166 = vector.load %arg5[%c0_54, %c0_55] : memref<2x128xf32, #tpu.memory_space<vmem>>, vector<2x128xf32>
      %c0_56 = arith.constant 0 : index
      %c0_57 = arith.constant 0 : index
      %c0_58 = arith.constant 0 : index
      %167 = vector.load %arg2[%c0_56, %c0_57, %c0_58] : memref<2x8x128xf32, #tpu.memory_space<vmem>>, vector<2x8x128xf32>
      %168 = vector.shape_cast %167 : vector<2x8x128xf32> to vector<16x128xf32>
      %169 = vector.extract_strided_slice %166 {offsets = [0, 0], sizes = [1, 128], strides = [1, 1]} : vector<2x128xf32> to vector<1x128xf32>
      %170 = vector.extract_strided_slice %166 {offsets = [1, 0], sizes = [1, 128], strides = [1, 1]} : vector<2x128xf32> to vector<1x128xf32>
      %cst_59 = arith.constant dense<0.000000e+00> : vector<16xf32>
      %171 = vector.multi_reduction <add>, %168, %cst_59 [1] : vector<16x128xf32> to vector<16xf32>
      %172 = vector.shape_cast %171 : vector<16xf32> to vector<16x1xf32>
      %cst_60 = arith.constant 1.280000e+02 : f32
      %173 = vector.broadcast %cst_60 : f32 to vector<16x1xf32>
      %174 = arith.divf %172, %173 : vector<16x1xf32>
      %175 = arith.mulf %168, %168 : vector<16x128xf32>
      %cst_61 = arith.constant dense<0.000000e+00> : vector<16xf32>
      %176 = vector.multi_reduction <add>, %175, %cst_61 [1] : vector<16x128xf32> to vector<16xf32>
      %177 = vector.shape_cast %176 : vector<16xf32> to vector<16x1xf32>
      %cst_62 = arith.constant 1.280000e+02 : f32
      %178 = vector.broadcast %cst_62 : f32 to vector<16x1xf32>
      %179 = arith.divf %177, %178 : vector<16x1xf32>
      %180 = arith.mulf %174, %174 : vector<16x1xf32>
      %181 = arith.subf %179, %180 : vector<16x1xf32>
      %cst_63 = arith.constant 0.000000e+00 : f32
      %182 = vector.broadcast %cst_63 : f32 to vector<16x1xf32>
      %183 = arith.maximumf %181, %182 : vector<16x1xf32>
      %184 = vector.broadcast %174 : vector<16x1xf32> to vector<16x128xf32>
      %185 = arith.subf %168, %184 : vector<16x128xf32>
      %cst_64 = arith.constant 9.99999996E-13 : f32
      %186 = vector.broadcast %cst_64 : f32 to vector<16x1xf32>
      %187 = arith.addf %183, %186 : vector<16x1xf32>
      %188 = math.rsqrt %187 : vector<16x1xf32>
      %189 = vector.broadcast %188 : vector<16x1xf32> to vector<16x128xf32>
      %190 = arith.mulf %185, %189 : vector<16x128xf32>
      %191 = vector.broadcast %169 : vector<1x128xf32> to vector<16x128xf32>
      %192 = arith.mulf %190, %191 : vector<16x128xf32>
      %193 = vector.broadcast %170 : vector<1x128xf32> to vector<16x128xf32>
      %194 = arith.addf %192, %193 : vector<16x128xf32>
      %c0_65 = arith.constant 0 : index
      %c0_66 = arith.constant 0 : index
      %195 = vector.load %arg14[%c0_65, %c0_66] : memref<16x128xf32, #tpu.memory_space<vmem>>, vector<16x128xf32>
      tpu.vector_store %arg14[%c0_65, %c0_66], %194 {strides = array<i32>} : memref<16x128xf32, #tpu.memory_space<vmem>>, vector<16x128xf32>,
    } else {
    }
    %c0 = arith.constant 0 : index
    %c0_1 = arith.constant 0 : index
    %3 = vector.load %arg14[%c0, %c0_1] : memref<16x128xf32, #tpu.memory_space<vmem>>, vector<16x128xf32>
    %c0_2 = arith.constant 0 : index
    %c0_3 = arith.constant 0 : index
    %c0_4 = arith.constant 0 : index
    %4 = vector.load %arg6[%c0_2, %c0_3, %c0_4] : memref<1x128x384xbf16, #tpu.memory_space<vmem>>, vector<1x128x384xbf16>
    %5 = vector.shape_cast %4 : vector<1x128x384xbf16> to vector<128x384xbf16>
    %c0_5 = arith.constant 0 : index
    %c0_6 = arith.constant 0 : index
    %c0_7 = arith.constant 0 : index
    %6 = vector.load %arg7[%c0_5, %c0_6, %c0_7] : memref<1x1x384xf32, #tpu.memory_space<vmem>>, vector<1x1x384xf32>
    %7 = vector.shape_cast %6 : vector<1x1x384xf32> to vector<1x384xf32>
    %c0_8 = arith.constant 0 : index
    %c0_9 = arith.constant 0 : index
    %c0_10 = arith.constant 0 : index
    %8 = vector.load %arg8[%c0_8, %c0_9, %c0_10] : memref<1x128x128xbf16, #tpu.memory_space<vmem>>, vector<1x128x128xbf16>
    %9 = vector.shape_cast %8 : vector<1x128x128xbf16> to vector<128x128xbf16>
    %c0_11 = arith.constant 0 : index
    %c0_12 = arith.constant 0 : index
    %c0_13 = arith.constant 0 : index
    %10 = vector.load %arg9[%c0_11, %c0_12, %c0_13] : memref<1x128x256xbf16, #tpu.memory_space<vmem>>, vector<1x128x256xbf16>
    %11 = vector.shape_cast %10 : vector<1x128x256xbf16> to vector<128x256xbf16>
    %c0_14 = arith.constant 0 : index
    %c0_15 = arith.constant 0 : index
    %c0_16 = arith.constant 0 : index
    %12 = vector.load %arg10[%c0_14, %c0_15, %c0_16] : memref<1x256x128xbf16, #tpu.memory_space<vmem>>, vector<1x256x128xbf16>
    %13 = vector.shape_cast %12 : vector<1x256x128xbf16> to vector<256x128xbf16>
    %c0_17 = arith.constant 0 : index
    %c0_18 = arith.constant 0 : index
    %c0_19 = arith.constant 0 : index
    %14 = vector.load %arg11[%c0_17, %c0_18, %c0_19] : memref<1x6x128xf32, #tpu.memory_space<vmem>>, vector<1x6x128xf32>
    %15 = vector.shape_cast %14 : vector<1x6x128xf32> to vector<6x128xf32>
    %c0_20 = arith.constant 0 : index
    %c0_21 = arith.constant 0 : index
    %c0_22 = arith.constant 0 : index
    %16 = vector.load %arg12[%c0_20, %c0_21, %c0_22] : memref<1x1x256xf32, #tpu.memory_space<vmem>>, vector<1x1x256xf32>
    %17 = vector.shape_cast %16 : vector<1x1x256xf32> to vector<1x256xf32>
    %18 = vector.extract_strided_slice %15 {offsets = [0, 0], sizes = [1, 128], strides = [1, 1]} : vector<6x128xf32> to vector<1x128xf32>
    %19 = vector.extract_strided_slice %15 {offsets = [1, 0], sizes = [1, 128], strides = [1, 1]} : vector<6x128xf32> to vector<1x128xf32>
    %20 = vector.extract_strided_slice %15 {offsets = [2, 0], sizes = [1, 128], strides = [1, 1]} : vector<6x128xf32> to vector<1x128xf32>
    %21 = vector.extract_strided_slice %15 {offsets = [3, 0], sizes = [1, 128], strides = [1, 1]} : vector<6x128xf32> to vector<1x128xf32>
    %22 = vector.extract_strided_slice %15 {offsets = [4, 0], sizes = [1, 128], strides = [1, 1]} : vector<6x128xf32> to vector<1x128xf32>
    %23 = vector.extract_strided_slice %15 {offsets = [5, 0], sizes = [1, 128], strides = [1, 1]} : vector<6x128xf32> to vector<1x128xf32>
    %24 = arith.truncf %3 : vector<16x128xf32> to vector<16x128xbf16>
    %cst = arith.constant dense<0.000000e+00> : vector<16x384xf32>
    %25 = tpu.matmul %24, %5, %cst {dimension_numbers = #tpu.dot_dimension_numbers<[1], [0], [0], [1], [0, 0, 1, 1], [], []>} : vector<16x128xbf16>, vector<128x384xbf16>, vector<16x384xf32> -> vector<16x384xf32>
    %26 = vector.broadcast %7 : vector<1x384xf32> to vector<16x384xf32>
    %27 = arith.addf %25, %26 : vector<16x384xf32>
    %28 = vector.extract_strided_slice %27 {offsets = [0, 0], sizes = [16, 32], strides = [1, 1]} : vector<16x384xf32> to vector<16x32xf32>
    %29 = vector.shape_cast %28 : vector<16x32xf32> to vector<2x8x32xf32>
    %30 = vector.extract_strided_slice %27 {offsets = [0, 32], sizes = [16, 32], strides = [1, 1]} : vector<16x384xf32> to vector<16x32xf32>
    %31 = vector.shape_cast %30 : vector<16x32xf32> to vector<2x8x32xf32>
    %32 = vector.extract_strided_slice %27 {offsets = [0, 64], sizes = [16, 32], strides = [1, 1]} : vector<16x384xf32> to vector<16x32xf32>
    %33 = vector.shape_cast %32 : vector<16x32xf32> to vector<2x8x32xf32>
    %34 = vector.extract_strided_slice %27 {offsets = [0, 96], sizes = [16, 32], strides = [1, 1]} : vector<16x384xf32> to vector<16x32xf32>
    %35 = vector.shape_cast %34 : vector<16x32xf32> to vector<2x8x32xf32>
    %36 = tpu.concatenate %29, %31, %33, %35 in 0 : vector<2x8x32xf32>, vector<2x8x32xf32>, vector<2x8x32xf32>, vector<2x8x32xf32> -> vector<8x8x32xf32>
    %37 = arith.truncf %36 : vector<8x8x32xf32> to vector<8x8x32xbf16>
    %38 = vector.extract_strided_slice %27 {offsets = [0, 128], sizes = [16, 32], strides = [1, 1]} : vector<16x384xf32> to vector<16x32xf32>
    %39 = vector.shape_cast %38 : vector<16x32xf32> to vector<2x8x32xf32>
    %40 = vector.extract_strided_slice %27 {offsets = [0, 160], sizes = [16, 32], strides = [1, 1]} : vector<16x384xf32> to vector<16x32xf32>
    %41 = vector.shape_cast %40 : vector<16x32xf32> to vector<2x8x32xf32>
    %42 = vector.extract_strided_slice %27 {offsets = [0, 192], sizes = [16, 32], strides = [1, 1]} : vector<16x384xf32> to vector<16x32xf32>
    %43 = vector.shape_cast %42 : vector<16x32xf32> to vector<2x8x32xf32>
    %44 = vector.extract_strided_slice %27 {offsets = [0, 224], sizes = [16, 32], strides = [1, 1]} : vector<16x384xf32> to vector<16x32xf32>
    %45 = vector.shape_cast %44 : vector<16x32xf32> to vector<2x8x32xf32>
    %46 = tpu.concatenate %39, %41, %43, %45 in 0 : vector<2x8x32xf32>, vector<2x8x32xf32>, vector<2x8x32xf32>, vector<2x8x32xf32> -> vector<8x8x32xf32>
    %47 = arith.truncf %46 : vector<8x8x32xf32> to vector<8x8x32xbf16>
    %48 = vector.extract_strided_slice %27 {offsets = [0, 256], sizes = [16, 32], strides = [1, 1]} : vector<16x384xf32> to vector<16x32xf32>
    %49 = vector.shape_cast %48 : vector<16x32xf32> to vector<2x8x32xf32>
    %50 = vector.extract_strided_slice %27 {offsets = [0, 288], sizes = [16, 32], strides = [1, 1]} : vector<16x384xf32> to vector<16x32xf32>
    %51 = vector.shape_cast %50 : vector<16x32xf32> to vector<2x8x32xf32>
    %52 = vector.extract_strided_slice %27 {offsets = [0, 320], sizes = [16, 32], strides = [1, 1]} : vector<16x384xf32> to vector<16x32xf32>
    %53 = vector.shape_cast %52 : vector<16x32xf32> to vector<2x8x32xf32>
    %54 = vector.extract_strided_slice %27 {offsets = [0, 352], sizes = [16, 32], strides = [1, 1]} : vector<16x384xf32> to vector<16x32xf32>
    %55 = vector.shape_cast %54 : vector<16x32xf32> to vector<2x8x32xf32>
    %56 = tpu.concatenate %49, %51, %53, %55 in 0 : vector<2x8x32xf32>, vector<2x8x32xf32>, vector<2x8x32xf32>, vector<2x8x32xf32> -> vector<8x8x32xf32>
    %57 = arith.truncf %56 : vector<8x8x32xf32> to vector<8x8x32xbf16>
    %c0_23 = arith.constant 0 : index
    %c0_24 = arith.constant 0 : index
    %c0_25 = arith.constant 0 : index
    %c0_26 = arith.constant 0 : index
    %58 = vector.load %arg3[%c0_23, %c0_24, %c0_25, %c0_26] : memref<4x2x1x8xf32, #tpu.memory_space<vmem>>, vector<4x2x1x8xf32>
    %59 = vector.shape_cast %58 : vector<4x2x1x8xf32> to vector<8x1x8xf32>
    "tpu.trace_start"() <{level = 10 : i32, message = "bqd,bkd->bqk"}> : () -> ()
    %cst_27 = arith.constant dense<0.000000e+00> : vector<8x8x8xf32>
    %60 = tpu.matmul %37, %47, %cst_27 {dimension_numbers = #tpu.dot_dimension_numbers<[2], [2], [1], [1], [0, 0, 0, 1, 1, 1], [0], [0]>} : vector<8x8x32xbf16>, vector<8x8x32xbf16>, vector<8x8x8xf32> -> vector<8x8x8xf32>
    "tpu.trace_stop"() : () -> ()
    %cst_28 = arith.constant 0.176776692 : f32
    %61 = vector.broadcast %cst_28 : f32 to vector<8x8x8xf32>
    %62 = arith.mulf %60, %61 : vector<8x8x8xf32>
    %63 = vector.broadcast %59 : vector<8x1x8xf32> to vector<8x8x8xf32>
    %64 = arith.addf %62, %63 : vector<8x8x8xf32>
    %cst_29 = arith.constant dense<0xFF800000> : vector<8x8xf32>
    %65 = vector.multi_reduction <maximumf>, %64, %cst_29 [2] : vector<8x8x8xf32> to vector<8x8xf32>
    %66 = vector.shape_cast %65 : vector<8x8xf32> to vector<8x8x1xf32>
    %67 = vector.broadcast %66 : vector<8x8x1xf32> to vector<8x8x8xf32>
    %68 = arith.subf %64, %67 : vector<8x8x8xf32>
    %69 = math.exp %68 : vector<8x8x8xf32>
    %cst_30 = arith.constant dense<0.000000e+00> : vector<8x8xf32>
    %70 = vector.multi_reduction <add>, %69, %cst_30 [2] : vector<8x8x8xf32> to vector<8x8xf32>
    %71 = vector.shape_cast %70 : vector<8x8xf32> to vector<8x8x1xf32>
    %72 = tpu.reciprocal %71 {approx = true} : vector<8x8x1xf32> -> vector<8x8x1xf32>
    %73 = vector.broadcast %72 : vector<8x8x1xf32> to vector<8x8x8xf32>
    %74 = arith.mulf %69, %73 : vector<8x8x8xf32>
    %75 = arith.truncf %74 : vector<8x8x8xf32> to vector<8x8x8xbf16>
    "tpu.trace_start"() <{level = 10 : i32, message = "bqk,bkd->bqd"}> : () -> ()
    %cst_31 = arith.constant dense<0.000000e+00> : vector<8x8x32xf32>
    %76 = tpu.matmul %75, %57, %cst_31 {dimension_numbers = #tpu.dot_dimension_numbers<[2], [1], [1], [2], [0, 0, 0, 1, 1, 2], [0], [0]>} : vector<8x8x8xbf16>, vector<8x8x32xbf16>, vector<8x8x32xf32> -> vector<8x8x32xf32>
    "tpu.trace_stop"() : () -> ()
    %77 = vector.shape_cast %76 : vector<8x8x32xf32> to vector<4x16x32xf32>
    %78 = vector.extract_strided_slice %77 {offsets = [0, 0, 0], sizes = [1, 16, 32], strides = [1, 1, 1]} : vector<4x16x32xf32> to vector<1x16x32xf32>
    %79 = vector.shape_cast %78 : vector<1x16x32xf32> to vector<16x32xf32>
    %80 = vector.extract_strided_slice %77 {offsets = [1, 0, 0], sizes = [1, 16, 32], strides = [1, 1, 1]} : vector<4x16x32xf32> to vector<1x16x32xf32>
    %81 = vector.shape_cast %80 : vector<1x16x32xf32> to vector<16x32xf32>
    %82 = vector.extract_strided_slice %77 {offsets = [2, 0, 0], sizes = [1, 16, 32], strides = [1, 1, 1]} : vector<4x16x32xf32> to vector<1x16x32xf32>
    %83 = vector.shape_cast %82 : vector<1x16x32xf32> to vector<16x32xf32>
    %84 = vector.extract_strided_slice %77 {offsets = [3, 0, 0], sizes = [1, 16, 32], strides = [1, 1, 1]} : vector<4x16x32xf32> to vector<1x16x32xf32>
    %85 = vector.shape_cast %84 : vector<1x16x32xf32> to vector<16x32xf32>
    %86 = tpu.concatenate %79, %81, %83, %85 in 1 : vector<16x32xf32>, vector<16x32xf32>, vector<16x32xf32>, vector<16x32xf32> -> vector<16x128xf32>
    %87 = arith.truncf %86 : vector<16x128xf32> to vector<16x128xbf16>
    %cst_32 = arith.constant dense<0.000000e+00> : vector<16x128xf32>
    %88 = tpu.matmul %87, %9, %cst_32 {dimension_numbers = #tpu.dot_dimension_numbers<[1], [0], [0], [1], [0, 0, 1, 1], [], []>} : vector<16x128xbf16>, vector<128x128xbf16>, vector<16x128xf32> -> vector<16x128xf32>
    %89 = vector.broadcast %18 : vector<1x128xf32> to vector<16x128xf32>
    %90 = arith.addf %88, %89 : vector<16x128xf32>
    %91 = arith.addf %3, %90 : vector<16x128xf32>
    %cst_33 = arith.constant dense<0.000000e+00> : vector<16xf32>
    %92 = vector.multi_reduction <add>, %91, %cst_33 [1] : vector<16x128xf32> to vector<16xf32>
    %93 = vector.shape_cast %92 : vector<16xf32> to vector<16x1xf32>
    %cst_34 = arith.constant 1.280000e+02 : f32
    %94 = vector.broadcast %cst_34 : f32 to vector<16x1xf32>
    %95 = arith.divf %93, %94 : vector<16x1xf32>
    %96 = arith.mulf %91, %91 : vector<16x128xf32>
    %cst_35 = arith.constant dense<0.000000e+00> : vector<16xf32>
    %97 = vector.multi_reduction <add>, %96, %cst_35 [1] : vector<16x128xf32> to vector<16xf32>
    %98 = vector.shape_cast %97 : vector<16xf32> to vector<16x1xf32>
    %cst_36 = arith.constant 1.280000e+02 : f32
    %99 = vector.broadcast %cst_36 : f32 to vector<16x1xf32>
    %100 = arith.divf %98, %99 : vector<16x1xf32>
    %101 = arith.mulf %95, %95 : vector<16x1xf32>
    %102 = arith.subf %100, %101 : vector<16x1xf32>
    %cst_37 = arith.constant 0.000000e+00 : f32
    %103 = vector.broadcast %cst_37 : f32 to vector<16x1xf32>
    %104 = arith.maximumf %102, %103 : vector<16x1xf32>
    %105 = vector.broadcast %95 : vector<16x1xf32> to vector<16x128xf32>
    %106 = arith.subf %91, %105 : vector<16x128xf32>
    %cst_38 = arith.constant 9.99999996E-13 : f32
    %107 = vector.broadcast %cst_38 : f32 to vector<16x1xf32>
    %108 = arith.addf %104, %107 : vector<16x1xf32>
    %109 = math.rsqrt %108 : vector<16x1xf32>
    %110 = vector.broadcast %109 : vector<16x1xf32> to vector<16x128xf32>
    %111 = arith.mulf %106, %110 : vector<16x128xf32>
    %112 = vector.broadcast %19 : vector<1x128xf32> to vector<16x128xf32>
    %113 = arith.mulf %111, %112 : vector<16x128xf32>
    %114 = vector.broadcast %20 : vector<1x128xf32> to vector<16x128xf32>
    %115 = arith.addf %113, %114 : vector<16x128xf32>
    %116 = arith.truncf %115 : vector<16x128xf32> to vector<16x128xbf16>
    %cst_39 = arith.constant dense<0.000000e+00> : vector<16x256xf32>
    %117 = tpu.matmul %116, %11, %cst_39 {dimension_numbers = #tpu.dot_dimension_numbers<[1], [0], [0], [1], [0, 0, 1, 1], [], []>} : vector<16x128xbf16>, vector<128x256xbf16>, vector<16x256xf32> -> vector<16x256xf32>
    %118 = vector.broadcast %17 : vector<1x256xf32> to vector<16x256xf32>
    %119 = arith.addf %117, %118 : vector<16x256xf32>
    %120 = arith.mulf %119, %119 : vector<16x256xf32>
    %121 = arith.mulf %119, %120 : vector<16x256xf32>
    %cst_40 = arith.constant 4.471500e-02 : f32
    %122 = vector.broadcast %cst_40 : f32 to vector<16x256xf32>
    %123 = arith.mulf %122, %121 : vector<16x256xf32>
    %124 = arith.addf %119, %123 : vector<16x256xf32>
    %cst_41 = arith.constant 0.797884583 : f32
    %125 = vector.broadcast %cst_41 : f32 to vector<16x256xf32>
    %126 = arith.mulf %125, %124 : vector<16x256xf32>
    %127 = math.tanh %126 : vector<16x256xf32>
    %cst_42 = arith.constant 1.000000e+00 : f32
    %128 = vector.broadcast %cst_42 : f32 to vector<16x256xf32>
    %129 = arith.addf %128, %127 : vector<16x256xf32>
    %cst_43 = arith.constant 5.000000e-01 : f32
    %130 = vector.broadcast %cst_43 : f32 to vector<16x256xf32>
    %131 = arith.mulf %130, %129 : vector<16x256xf32>
    %132 = arith.mulf %119, %131 : vector<16x256xf32>
    %133 = arith.truncf %132 : vector<16x256xf32> to vector<16x256xbf16>
    %cst_44 = arith.constant dense<0.000000e+00> : vector<16x128xf32>
    %134 = tpu.matmul %133, %13, %cst_44 {dimension_numbers = #tpu.dot_dimension_numbers<[1], [0], [0], [1], [0, 0, 1, 1], [], []>} : vector<16x256xbf16>, vector<256x128xbf16>, vector<16x128xf32> -> vector<16x128xf32>
    %135 = vector.broadcast %21 : vector<1x128xf32> to vector<16x128xf32>
    %136 = arith.addf %134, %135 : vector<16x128xf32>
    %137 = arith.addf %115, %136 : vector<16x128xf32>
    %cst_45 = arith.constant dense<0.000000e+00> : vector<16xf32>
    %138 = vector.multi_reduction <add>, %137, %cst_45 [1] : vector<16x128xf32> to vector<16xf32>
    %139 = vector.shape_cast %138 : vector<16xf32> to vector<16x1xf32>
    %cst_46 = arith.constant 1.280000e+02 : f32
    %140 = vector.broadcast %cst_46 : f32 to vector<16x1xf32>
    %141 = arith.divf %139, %140 : vector<16x1xf32>
    %142 = arith.mulf %137, %137 : vector<16x128xf32>
    %cst_47 = arith.constant dense<0.000000e+00> : vector<16xf32>
    %143 = vector.multi_reduction <add>, %142, %cst_47 [1] : vector<16x128xf32> to vector<16xf32>
    %144 = vector.shape_cast %143 : vector<16xf32> to vector<16x1xf32>
    %cst_48 = arith.constant 1.280000e+02 : f32
    %145 = vector.broadcast %cst_48 : f32 to vector<16x1xf32>
    %146 = arith.divf %144, %145 : vector<16x1xf32>
    %147 = arith.mulf %141, %141 : vector<16x1xf32>
    %148 = arith.subf %146, %147 : vector<16x1xf32>
    %cst_49 = arith.constant 0.000000e+00 : f32
    %149 = vector.broadcast %cst_49 : f32 to vector<16x1xf32>
    %150 = arith.maximumf %148, %149 : vector<16x1xf32>
    %151 = vector.broadcast %141 : vector<16x1xf32> to vector<16x128xf32>
    %152 = arith.subf %137, %151 : vector<16x128xf32>
    %cst_50 = arith.constant 9.99999996E-13 : f32
    %153 = vector.broadcast %cst_50 : f32 to vector<16x1xf32>
    %154 = arith.addf %150, %153 : vector<16x1xf32>
    %155 = math.rsqrt %154 : vector<16x1xf32>
    %156 = vector.broadcast %155 : vector<16x1xf32> to vector<16x128xf32>
    %157 = arith.mulf %152, %156 : vector<16x128xf32>
    %158 = vector.broadcast %22 : vector<1x128xf32> to vector<16x128xf32>
    %159 = arith.mulf %157, %158 : vector<16x128xf32>
    %160 = vector.broadcast %23 : vector<1x128xf32> to vector<16x128xf32>
    %161 = arith.addf %159, %160 : vector<16x128xf32>
    %c0_51 = arith.constant 0 : index
    %c0_52 = arith.constant 0 : index
    %162 = vector.load %arg14[%c0_51, %c0_52] : memref<16x128xf32, #tpu.memory_space<vmem>>, vector<16x128xf32>
    tpu.vector_store %arg14[%c0_51, %c0_52], %161 {strides = array<i32>} : memref<16x128xf32, #tpu.memory_space<vmem>>, vector<16x128xf32>,
    %c1_i32 = arith.constant 1 : i32
    %163 = arith.cmpi eq, %arg1, %c1_i32 : i32
    %164 = arith.extui %163 : i1 to i32
    %c0_i32_53 = arith.constant 0 : i32
    %165 = arith.cmpi ne, %164, %c0_i32_53 : i32
    scf.if %165 {
      %166 = vector.shape_cast %161 : vector<16x128xf32> to vector<2x8x128xf32>
      %c0_54 = arith.constant 0 : index
      %c0_55 = arith.constant 0 : index
      %c0_56 = arith.constant 0 : index
      %167 = vector.load %arg4[%c0_54, %c0_55, %c0_56] : memref<2x1x8xf32, #tpu.memory_space<vmem>>, vector<2x1x8xf32>
      "tpu.trace_start"() <{level = 10 : i32, message = "bqs,bsh->bqh"}> : () -> ()
      %cst_57 = arith.constant dense<0.000000e+00> : vector<2x1x128xf32>
      %168 = tpu.matmul %167, %166, %cst_57 {dimension_numbers = #tpu.dot_dimension_numbers<[2], [1], [1], [2], [0, 0, 0, 1, 1, 2], [0], [0]>} : vector<2x1x8xf32>, vector<2x8x128xf32>, vector<2x1x128xf32> -> vector<2x1x128xf32>
      "tpu.trace_stop"() : () -> ()
      %c0_58 = arith.constant 0 : index
      %c0_59 = arith.constant 0 : index
      %c0_60 = arith.constant 0 : index
      %169 = vector.load %arg13[%c0_58, %c0_59, %c0_60] : memref<2x1x128xf32, #tpu.memory_space<vmem>>, vector<2x1x128xf32>
      tpu.vector_store %arg13[%c0_58, %c0_59, %c0_60], %168 {strides = array<i32>} : memref<2x1x128xf32, #tpu.memory_space<vmem>>, vector<2x1x128xf32>,
    } else {
    }
    return
  }
  func.func @transform_0(%arg0: i32, %arg1: i32) -> (i32, i32, i32) {
    %c0_i32 = arith.constant 0 : i32
    %c0_i32_0 = arith.constant 0 : i32
    %c0_i32_1 = arith.constant 0 : i32
    return %arg0, %c0_i32, %c0_i32_0 : i32, i32, i32
  }
  func.func @transform_1(%arg0: i32, %arg1: i32) -> (i32, i32, i32, i32) {
    %c0_i32 = arith.constant 0 : i32
    %c0_i32_0 = arith.constant 0 : i32
    %c0_i32_1 = arith.constant 0 : i32
    %c0_i32_2 = arith.constant 0 : i32
    return %c0_i32, %arg0, %c0_i32_0, %c0_i32_1 : i32, i32, i32, i32
  }
  func.func @transform_2(%arg0: i32, %arg1: i32) -> (i32, i32, i32) {
    %c0_i32 = arith.constant 0 : i32
    %c0_i32_0 = arith.constant 0 : i32
    %c0_i32_1 = arith.constant 0 : i32
    return %arg0, %c0_i32, %c0_i32_0 : i32, i32, i32
  }
  func.func @transform_3(%arg0: i32, %arg1: i32) -> (i32, i32) {
    %c0_i32 = arith.constant 0 : i32
    %c0_i32_0 = arith.constant 0 : i32
    %c0_i32_1 = arith.constant 0 : i32
    return %c0_i32, %c0_i32_0 : i32, i32
  }
  func.func @transform_4(%arg0: i32, %arg1: i32) -> (i32, i32, i32) {
    %c0_i32 = arith.constant 0 : i32
    %c0_i32_0 = arith.constant 0 : i32
    %c0_i32_1 = arith.constant 0 : i32
    return %arg1, %c0_i32, %c0_i32_0 : i32, i32, i32
  }
  func.func @transform_5(%arg0: i32, %arg1: i32) -> (i32, i32, i32) {
    %c0_i32 = arith.constant 0 : i32
    %c0_i32_0 = arith.constant 0 : i32
    %c0_i32_1 = arith.constant 0 : i32
    return %arg1, %c0_i32, %c0_i32_0 : i32, i32, i32
  }
  func.func @transform_6(%arg0: i32, %arg1: i32) -> (i32, i32, i32) {
    %c0_i32 = arith.constant 0 : i32
    %c0_i32_0 = arith.constant 0 : i32
    %c0_i32_1 = arith.constant 0 : i32
    return %arg1, %c0_i32, %c0_i32_0 : i32, i32, i32
  }
  func.func @transform_7(%arg0: i32, %arg1: i32) -> (i32, i32, i32) {
    %c0_i32 = arith.constant 0 : i32
    %c0_i32_0 = arith.constant 0 : i32
    %c0_i32_1 = arith.constant 0 : i32
    return %arg1, %c0_i32, %c0_i32_0 : i32, i32, i32
  }
  func.func @transform_8(%arg0: i32, %arg1: i32) -> (i32, i32, i32) {
    %c0_i32 = arith.constant 0 : i32
    %c0_i32_0 = arith.constant 0 : i32
    %c0_i32_1 = arith.constant 0 : i32
    return %arg1, %c0_i32, %c0_i32_0 : i32, i32, i32
  }
  func.func @transform_9(%arg0: i32, %arg1: i32) -> (i32, i32, i32) {
    %c0_i32 = arith.constant 0 : i32
    %c0_i32_0 = arith.constant 0 : i32
    %c0_i32_1 = arith.constant 0 : i32
    return %arg1, %c0_i32, %c0_i32_0 : i32, i32, i32
  }
  func.func @transform_10(%arg0: i32, %arg1: i32) -> (i32, i32, i32) {
    %c0_i32 = arith.constant 0 : i32
    %c0_i32_0 = arith.constant 0 : i32
    %c0_i32_1 = arith.constant 0 : i32
    return %arg1, %c0_i32, %c0_i32_0 : i32, i32, i32
  }
  func.func @transform_11(%arg0: i32, %arg1: i32) -> (i32, i32, i32) {
    %c0_i32 = arith.constant 0 : i32
    %c0_i32_0 = arith.constant 0 : i32
    %c0_i32_1 = arith.constant 0 : i32
    return %arg0, %c0_i32, %c0_i32_0 : i32, i32, i32
  }
}

</mosaic_0001>

<bundles_post_ra>
// kernel: embed_bert_forward.1
= control target key start
LH: loop header
LB: loop body
LE: loop exit
PB: predicated region body
PF: predicated region fallthrough
CT: control target
= control target key end

     0   :  { %s3569_s0 = inlined_call_operand.vmem [shape: f32[4,8,128], index: 0, kind: input, shape index: {}]   ;;  %s3570_s1 = inlined_call_operand.vmem [shape: f32[4,4,1,8], index: 1, kind: input, shape index: {}]   ;;  %s3571_s2 = inlined_call_operand.vmem [shape: f32[4,1,8], index: 2, kind: input, shape index: {}]   ;;  %s3572_s3 = inlined_call_operand.vmem [shape: f32[2,128], index: 3, kind: input, shape index: {}]   ;;  %s3573_s4 = inlined_call_operand.hbm [shape: bf16[2,128,384], index: 4, kind: input, shape index: {}]   ;;  %s3574_s5 = inlined_call_operand.vmem [shape: f32[2,1,384], index: 5, kind: input, shape index: {}]   ;;  %s3575_s6 = inlined_call_operand.hbm [shape: bf16[2,128,128], index: 6, kind: input, shape index: {}]   ;;  %s3576_s7 = inlined_call_operand.vmem [shape: bf16[2,128,256], index: 7, kind: input, shape index: {}]   ;;  %s3577_s8 = inlined_call_operand.vmem [shape: bf16[2,256,128], index: 8, kind: input, shape index: {}]   ;;  %s3578_s9 = inlined_call_operand.vmem [shape: f32[2,6,128], index: 9, kind: input, shape index: {}]   ;;  %s3579_s10 = inlined_call_operand.vmem [shape: f32[2,1,256], index: 10, kind: input, shape index: {}]   ;;  %s3580_s11 = inlined_call_operand.vmem [shape: f32[4,1,128], index: 11, kind: output, shape index: {}]  }
   0x1   :  { %3587 = sst [smem:[#allocation18_spill]] %s3569_s0 }
   0x2   :  { %3588 = sst [smem:[#allocation19_spill]] %s3570_s1 }
   0x3   :  { %3589 = sst [smem:[#allocation20_spill]] %s3571_s2 }
   0x4   :  { %3590 = sst [smem:[#allocation21_spill]] %s3572_s3 }
   0x5   :  { %3591 = sst [smem:[#allocation22_spill]] %s3573_s4 }
   0x6   :  { %3592 = sst [smem:[#allocation23_spill]] %s3574_s5 }
   0x7   :  { %3593 = sst [smem:[#allocation24_spill]] %s3575_s6 }
   0x8   :  { %3594 = sst [smem:[#allocation25_spill]] %s3576_s7 }
   0x9   :  { %3595 = sst [smem:[#allocation26_spill]] %s3577_s8 }
   0xa   :  { %3596 = sst [smem:[#allocation27_spill]] %s3578_s9 }
   0xb   :  { %3597 = sst [smem:[#allocation28_spill]] %s3579_s10 }
   0xc   :  { %3598 = sst [smem:[#allocation29_spill]] %s3580_s11 }
   0xd   :  { %16 = vsyncpa [#allocation5], 0 }
   0xe   :  { %18 = vsyncpa [#allocation5 + $0x1], 0 }
   0xf   :  { %19 = vsyncpa [#allocation7], 0 }
  0x10   :  { %21 = vsyncpa [#allocation7 + $0x1], 0  ;;  %s3064_s17 = smov 0   ;;  %s3066_s18 = smov 0  }
  0x11   :  { %s3068_s19 = smov 0   ;;  %s3070_s20 = smov 0  }
  0x12   :  { %s3072_s21 = smov 0   ;;  %s3074_s22 = smov 0  }
  0x13   :  { %s3076_s23 = smov 0   ;;  %s3078_s24 = smov 0  }
  0x14   :  { %s3080_s25 = smov 0   ;;  %s3082_s26 = smov 0  }
  0x15 LB: > { %3599 = sst [smem:[#allocation10_spill]] %s2965_s19  ;;  %s2292_s27 = sadd.s32 4294967295, %s2993_s26   ;;  %s2993_s26 = sphi %s3082_s26, %s27_s26   ;;  %s2989_s25 = sphi %s3080_s25, %s3629_s25   ;;  %s2985_s24 = sphi %s3078_s24, %s3628_s24   ;;  %s2981_s23 = sphi %s3076_s23, %s3627_s23   ;;  %s2977_s22 = sphi %s3074_s22, %s3626_s22   ;;  %s2973_s21 = sphi %s3072_s21, %s3625_s21   ;;  %s2969_s20 = sphi %s3070_s20, %s3624_s20   ;;  %s2965_s19 = sphi %s3068_s19, %s3623_s19   ;;  %s2961_s18 = sphi %s3066_s18, %s3631_s18   ;;  %s2957_s17 = sphi %s3064_s17, %s3630_s17  }
  0x16   : > { %3600 = sst [smem:[#allocation11_spill]] %s2973_s21  ;;  %s36_s28 = sadd.s32 1, %s2985_s24 }
  0x17   : > { %3601 = sst [smem:[#allocation12_spill]] %s2985_s24  ;;  %p37_p0 = scmp.ge.s32.totalorder %s36_s28, 2 }
  0x18   : > { %3602 = sst [smem:[#allocation13_spill]] %s2989_s25  ;;  %s39_s29 = sadd.s32 1, %s2989_s25 }
  0x19   : > { %s72_s30 = sadd.s32 1, %s2973_s21  ;;  %p79_p1 = scmp.ne.s32.totalorder %s2973_s21, %s2969_s20 }
  0x1a   : > { %s3633_s28 = smov (%p37_p0, %s36_s28), 0  ;;  %s3635_s29 = smov (!%p37_p0, %s39_s29), %s2989_s25 }
  0x1b   : > { %3603 = sst [smem:[#allocation14_spill]] %s3633_s28  ;;  %p80_p2 = scmp.eq.s32.totalorder %s2993_s26, 0 }
  0x1c   : > { %s142_s12 = ssub.s32 %s2985_s24, %s3633_s28  ;;  %p41_p3 = scmp.ge.s32.totalorder %s3635_s29, 2 }
  0x1d   : > { %p143_p4 = scmp.eq.s32.totalorder %s142_s12, 0  ;;  %p3126_p5 = por %p80_p2, %p79_p1 }
  0x1e   : > { %s145_s14 = sadd.s32 1, %s2965_s19  ;;  %s3637_s29 = smov (%p41_p3, %s3635_s29), 0 }
  0x1f   : > { %3605 = sst [smem:[#allocation15_spill]] %s3637_s29  ;;  %s69_s16 = ssub.s32 %s2989_s25, %s3637_s29 }
  0x20   : > { %s3134_s15 = scalar_select %p143_p4, %s2965_s19, %s145_s14  }
  0x21   : > { %p152_p6 = scmp.ne.s32.totalorder %s2965_s19, %s2961_s18  ;;  %p70_p7 = scmp.eq.s32.totalorder %s69_s16, 0 }
  0x22   : > { %3606 = sst [smem:[#allocation16_spill]] %s3134_s15  ;;  %p158_p8 = scmp.ne.s32.totalorder %s2961_s18, %s2957_s17 }
  0x23   : > { %p3142_p9 = por %p152_p6, %p80_p2  ;;  %p159_p10 = scmp.eq.s32.totalorder %s2292_s27, 0 }
  0x24   : > { %s3147_s12 = scalar_select %p70_p7, %s2973_s21, %s72_s30  }
  0x25   : > { %p3149_p11 = por %p159_p10, %p158_p8  ;;  %p2295_p12 = scmp.ge.s32.totalorder %s2993_s26, 4 }
  0x26   : > { %3608 = sst [smem:[#allocation17_spill]] %s3147_s12 }
  0x27   : > { %363 = sbr.rel (%p2295_p12) target bundleno = 72 (0x48), region = 20 }
  0x2c   : > { %375 = sbr.rel (!%p3126_p5) target bundleno = 58 (0x3a), region = 28  ;;  %s377_s17 = sand.u32 (%p3126_p5), 1, %s2973_s21  }
  0x2d   : > { %s2297_s14 = sshll.u32 (%p3126_p5), %s2989_s25, 1  ;;  %s2296_s16 = sshll.u32 (%p3126_p5), %s377_s17, 3 }
  0x2e   : > { %s3610_s1 = sld [smem:[#allocation19_spill]] (%p3126_p5)  ;;  %s379_s30 = scalar_lea.vmem (%p3126_p5), [#allocation3], %s2296_s16 }
  0x34   : > { %s381_s27 = scalar_lea.vmem %s3610_s1, %s2297_s14 }
  0x35   : > { %v398_v0 = vld [vmem:[%s381_s27] sm:$0x3]  ;;  %v400_v1 = vld [vmem:[%s381_s27 + $0x4] sm:$0x3]  ;;  %v402_v2 = vld [vmem:[%s381_s27 + $0x8] sm:$0x3] }
  0x36   : > { %399 = vst [vmem:[%s379_s30] sm:$0x3] %v398_v0  ;;  %v404_v3 = vld [vmem:[%s381_s27 + $0xc] sm:$0x3] }
  0x37   : > { %401 = vst [vmem:[%s379_s30 + $0x2] sm:$0x3] %v400_v1 }
  0x38   : > { %403 = vst [vmem:[%s379_s30 + $0x4] sm:$0x3] %v402_v2 }
  0x39   : > { %405 = vst [vmem:[%s379_s30 + $0x6] sm:$0x3] %v404_v3 }
  0x3a PF: > { %s3162_s13 = sand.u32 1, %s2965_s19   ;;  %s2661_s29 = smul.u32 192, %s2985_s24 }
  0x3b   : > { %s2660_s15 = smul.u32 192, %s3162_s13  ;;  %s3611_s4 = sld [smem:[#allocation22_spill]] }
  0x3c   : > { %s447_s25 = scalar_lea.sflag [#allocation5], %s3162_s13  ;;  %s2995_s12 = smov 192  }
  0x3d   : > { %s450_s30 = scalar_lea.vmem [#allocation4], %s2660_s15  ;;  %s2996_s21 = smov 12  }
  0x3e   : > { %s458_s1 = sshll.u32 %s450_s30, 4  ;;  %s2299_s19 = sshll.u32 %s3162_s13, 6  ;;  %s459_s1 = int_to_ptr.vmem [resolvable:$true] %s458_s1 }
  0x3f   : > { %s2593_s11 = sshll.u32 %s2985_s24, 6  ;;  %s3612_s6 = sld [smem:[#allocation24_spill]] }
  0x40   : > { %s479_s17 = scalar_lea.vmem [#allocation6], %s2299_s19  ;;  %s476_s15 = scalar_lea.sflag [#allocation7], %s3162_s13 }
  0x41   : > { %s455_s16 = scalar_lea.hbm %s3611_s4, %s2661_s29  ;;  %s487_s29 = sshll.u32 %s479_s17, 4  ;;  %s488_s29 = int_to_ptr.vmem [resolvable:$true] %s487_s29 }
  0x42   : > { %s456_s27 = sshll.u32 %s455_s16, 4  ;;  %s2997_s16 = smov 64   ;;  %s457_s27 = int_to_ptr.hbm [resolvable:$true] %s456_s27 }
  0x43   : > { %2664 = dma.hbm_to_vmem [thread:$0]  (%p3142_p9), %s457_s27, 3072, %s459_s1, %s447_s25, %s2995_s12, %s2995_s12, %s2996_s21  }
  0x44   : > { %s2998_s30 = smov 4  }
  0x45   : > { %s484_s8 = scalar_lea.hbm %s3612_s6, %s2593_s11 }
  0x46   : > { %s485_s14 = sshll.u32 %s484_s8, 4  ;;  %s486_s14 = int_to_ptr.hbm [resolvable:$true] %s485_s14 }
  0x47   : > { %2665 = dma.hbm_to_vmem [thread:$0]  (%p3142_p9), %s486_s14, 1024, %s488_s29, %s476_s15, %s2997_s16, %s2997_s16, %s2998_s30  }
  0x48 PF: > { %p2302_p13 = scmp.ge.s32.totalorder %s2993_s26, 1  ;;  %p525_p0 = scmp.lt.s32.totalorder %s2993_s26, 5 }
  0x4a   : > { %p526_p1 = pnand %p2302_p13, %p525_p0 }
  0x4b   : > { %s532_s1 = sand.u32 (!%p526_p1), 1, %s2969_s20   ;;  %s538_s9 = sand.u32 (!%p526_p1), 1, %s2961_s18  }
  0x4c   : > { %529 = sbr.rel (%p526_p1) target bundleno = 2096 (0x830), region = 101  ;;  %s2303_s8 = sshll.u32 (!%p526_p1), %s532_s1, 3 }
  0x4d   : > { %s2662_s10 = smul.u32 (!%p526_p1), 192, %s538_s9  ;;  %s3184_s11 = scalar_lea.vmem (!%p526_p1), [#allocation3], %s2303_s8 }
  0x4e   : > { %s539_s19 = scalar_lea.sflag (!%p526_p1), [#allocation5], %s538_s9 }
  0x4f   : > { %s3186_s21 = scalar_lea.vmem (!%p526_p1), [#allocation4], %s2662_s10 }
  0x51   : > { %2948 = dma.done.wait (%p3149_p11), %s539_s19, 3072  }
  0x52   : > { %2950 = vsyncadd (%p3149_p11), %s539_s19, 4294964224  ;;  %s2304_s3 = sshll.u32 %s538_s9, 6  ;;  %s549_s25 = scalar_lea.sflag [#allocation7], %s538_s9 }
  0x53   : > { %s3192_s12 = scalar_lea.vmem [#allocation6], %s2304_s3 }
  0x54   : > { %2952 = dma.done.wait (%p3149_p11), %s549_s25, 1024  }
  0x55   : > { %2954 = vsyncadd (%p3149_p11), %s549_s25, 4294966272  ;;  %s2305_s20 = sshll.u32 %s2981_s23, 1  ;;  %p643_p2 = scmp.lt.s32.totalorder %s2977_s22, 1 }
  0x56   : > { %p632_p3 = scmp.lt.s32.totalorder %s2305_s20, 3  ;;  %s3613_s2 = sld [smem:[#allocation20_spill]] }
  0x57   : > { %s644_s13 = scalar_select %p643_p2, %s2977_s22, 1 }
  0x58   : > { %s3639_s20 = smov (!%p632_p3, %s2305_s20), 3  ;;  %s3614_s0 = sld [smem:[#allocation18_spill]] }
  0x59   : > { %s2663_s27 = smul.u32 3, %s644_s13  ;;  %s2594_s17 = sshll.u32 %s644_s13, 7 }
  0x5a   : > { %s2306_s29 = sshll.u32 %s3639_s20, 3  ;;  %s3615_s5 = sld [smem:[#allocation23_spill]] }
  0x5b   : > { %s3616_s7 = sld [smem:[#allocation25_spill]]  ;;  %s2312_s15 = sshll.u32 %s644_s13, 3 }
  0x5c   : > { %s3204_s16 = scalar_lea.vmem %s3613_s2, %s3639_s20  ;;  %s3617_s6 = sld [smem:[#allocation26_spill]] }
  0x5d   : > { %s2313_s2 = sshll.u32 %s644_s13, 1  ;;  %s3619_s8 = sld [smem:[#allocation28_spill]] }
  0x5e   : > { %s635_s28 = scalar_lea.vmem %s3614_s0, %s2306_s29  ;;  %s3618_s29 = sld [smem:[#allocation27_spill]] }
  0x5f   : > { %p2315_p4 = scmp.ne.s32.totalorder %s2977_s22, 0 }
  0x60   : > { %s3212_s23 = scalar_lea.vmem %s3615_s5, %s2663_s27  ;;  %s3620_s5 = sld [smem:[#allocation29_spill]] }
  0x61   : > { %s3217_s3 = scalar_lea.vmem %s3616_s7, %s2594_s17 }
  0x62   : > { %s3222_s14 = scalar_lea.vmem %s3617_s6, %s2594_s17  ;;  %674 = sbr.rel (%p2315_p4) target bundleno = 263 (0x107), region = 117 }
  0x63   : > { %s3232_s0 = scalar_lea.vmem %s3619_s8, %s2313_s2 }
  0x64   : > { %s3227_s1 = scalar_lea.vmem %s3618_s29, %s2312_s15 }
  0x66   : > { %s3237_s7 = scalar_lea.vmem %s3620_s5, %s3639_s20  ;;  %s3621_s5 = sld [smem:[#allocation21_spill]] (!%p2315_p4) }
  0x67   : > { %v676_v4 = vld [vmem:[%s635_s28] sm:$0xff]  ;;  %v677_v6 = vld [vmem:[%s635_s28 + $0x8] sm:$0xff]  ;;  %v2999_v8 = vmov 128.0  }
  0x68   : > { %678 = vadd.xlane.f32.xlu0 %v676_v4  ;;  %v691_v5 = vmul.f32 %v676_v4, %v676_v4  ;;  %v692_v7 = vmul.f32 %v677_v6, %v677_v6  ;;  %2757 = vrcp.f32 %v2999_v8 }
  0x6a   : > { %693 = vadd.xlane.f32.xlu1 %v691_v5 }
  0x6c   : > { %v675_v35 = vld [vmem:[%s3621_s5] sm:$0x3] }
  0x6d   : > { %v731_v40 = vperm.slane %v675_v35, 0  ;;  %v734_v44 = vperm.slane %v675_v35, 1 }
  0x6e   : > { %v2758_v9 = vpop.eup %2757 }
  0x6f   : > { %v683_v10 = vmul.f32 128.0, %v2758_v9  ;;  %vm687_vm0 = vweird.f32 %v2758_v9 }
  0x70   : > { %680 = vadd.xlane.f32.xlu0 %v677_v6 }
  0x71   : > { %v684_v11 = vsub.f32 1.0, %v683_v10 }
  0x72   : > { %695 = vadd.xlane.f32.xlu1 %v692_v7 }
  0x73   : > { %v685_v12 = vmul.f32 %v2758_v9, %v684_v11 }
  0x75   : > { %v686_v13 = vadd.f32 %v2758_v9, %v685_v12 }
  0x77   : > { %v688_v14 = vsel %vm687_vm0, %v2758_v9, %v686_v13 }
  0xdb   : > { %v679_v15 = vpop.xlane.xlu0 %678 }
  0xdc   : > { %v689_v16 = vmul.f32 %v688_v14, %v679_v15 }
  0xdd   : > { %v694_v17 = vpop.xlane.xlu1 %693 }
  0xde   : > { %v699_v18 = vmul.f32 %v689_v16, %v689_v16  ;;  %v697_v19 = vmul.f32 %v694_v17, %v688_v14  ;;  %v705_v39 = vsub.f32 %v676_v4, %v689_v16 }
  0xe0   : > { %v701_v20 = vsub.f32 %v697_v19, %v699_v18 }
  0xe2   : > { %v703_v21 = vmax.f32 %v701_v20, 0.0 }
  0xe3   : > { %v681_v22 = vpop.xlane.xlu0 %680 }
  0xe4   : > { %v707_v23 = vadd.f32 1e-12, %v703_v21  ;;  %v690_v24 = vmul.f32 %v688_v14, %v681_v22 }
  0xe5   : > { %v696_v25 = vpop.xlane.xlu1 %695 }
  0xe6   : > { %2759 = vrsqrt.f32 %v707_v23  ;;  %v700_v26 = vmul.f32 %v690_v24, %v690_v24  ;;  %v698_v27 = vmul.f32 %v696_v25, %v688_v14  ;;  %vm715_vm2 = vweird.f32 %v707_v23 }
  0xe7   : > { %v706_v51 = vsub.f32 %v677_v6, %v690_v24 }
  0xe8   : > { %v702_v28 = vsub.f32 %v698_v27, %v700_v26 }
  0xea   : > { %v704_v29 = vmax.f32 %v702_v28, 0.0 }
  0xec   : > { %v2760_v30 = vpop.eup %2759  ;;  %v708_v32 = vadd.f32 1e-12, %v704_v29 }
  0xed   : > { %v710_v31 = vmul.f32 %v2760_v30, %v707_v23  ;;  %vm716_vm1 = vweird.f32 %v2760_v30 }
  0xee   : > { %2761 = vrsqrt.f32 %v708_v32  ;;  %vm717_vm3 = vmor %vm715_vm2, %vm716_vm1  ;;  %vm725_vm5 = vweird.f32 %v708_v32 }
  0xef   : > { %v711_v33 = vmul.f32 %v2760_v30, %v710_v31 }
  0xf1   : > { %v712_v34 = vmul.f32 0.5, %v711_v33 }
  0xf3   : > { %v713_v36 = vsub.f32 1.5, %v712_v34 }
  0xf4   : > { %v2762_v37 = vpop.eup %2761 }
  0xf5   : > { %v714_v38 = vmul.f32 %v2760_v30, %v713_v36  ;;  %v720_v41 = vmul.f32 %v2762_v37, %v708_v32  ;;  %vm726_vm4 = vweird.f32 %v2762_v37 }
  0xf6   : > { %vm727_vm6 = vmor %vm725_vm5, %vm726_vm4 }
  0xf7   : > { %v718_v42 = vsel %vm717_vm3, %v2760_v30, %v714_v38  ;;  %v721_v45 = vmul.f32 %v2762_v37, %v720_v41 }
  0xf8   : > { %v729_v43 = vmul.f32 %v718_v42, %v705_v39 }
  0xf9   : > { %v722_v47 = vmul.f32 0.5, %v721_v45 }
  0xfa   : > { %v732_v46 = vmul.f32 %v731_v40, %v729_v43 }
  0xfb   : > { %v723_v49 = vsub.f32 1.5, %v722_v47 }
  0xfc   : > { %v735_v48 = vadd.f32 %v734_v44, %v732_v46 }
  0xfd   : > { %v724_v50 = vmul.f32 %v2762_v37, %v723_v49 }
  0xfe   : > { %737 = vst [vmem:[#allocation2] sm:$0xff] %v735_v48 }
  0xff   : > { %v728_v52 = vsel %vm727_vm6, %v2762_v37, %v724_v50 }
 0x100   : > { %v730_v53 = vmul.f32 %v728_v52, %v706_v51 }
 0x102   : > { %v733_v54 = vmul.f32 %v731_v40, %v730_v53 }
 0x104   : > { %v736_v55 = vadd.f32 %v734_v44, %v733_v54 }
 0x106   : > { %738 = vst [vmem:[#allocation2 + $0x8] sm:$0xff] %v736_v55 }
 0x107 PF: > { %v2402_v56 = vld [vmem:[%s3186_s21 + $0xa8] sm:$0xf]  ;;  %v2618_v57 = vld [vmem:[%s3186_s21 + $0xb0] sm:$0xf0]  ;;  %v2617_v58 = vld [vmem:[%s3186_s21 + $0xac] sm:$0xf] }
 0x108   : > { %v2403_v59 = vor.u32 %v2618_v57, %v2402_v56  ;;  %v2404_v60 = vld [vmem:[%s3186_s21 + $0xb4] sm:$0xf0]  ;;  %v2390_v61 = vld [vmem:[%s3186_s21 + $0x90] sm:$0xf]  ;;  %v2615_v62 = vld [vmem:[%s3186_s21 + $0x98] sm:$0xf0] }
 0x109   : > { %v2407_v63 = vor.u32 %v2617_v58, %v2404_v60  ;;  %v2614_v0 = vld [vmem:[%s3186_s21 + $0x94] sm:$0xf]  ;;  %v2392_v1 = vld [vmem:[%s3186_s21 + $0x9c] sm:$0xf0]  ;;  %v2391_v2 = vor.u32 %v2615_v62, %v2390_v61  ;;  %v2378_v4 = vld [vmem:[%s3186_s21 + $0x78] sm:$0xf] }
 0x10a   : > { %976 = vmatpush.bf16.msra.mxu0 %v2403_v59  ;;  %v2395_v3 = vor.u32 %v2614_v0, %v2392_v1  ;;  %v2612_v5 = vld [vmem:[%s3186_s21 + $0x80] sm:$0xf0]  ;;  %v2611_v6 = vld [vmem:[%s3186_s21 + $0x7c] sm:$0xf]  ;;  %v2380_v7 = vld [vmem:[%s3186_s21 + $0x84] sm:$0xf0] }
 0x10b   : > { %990 = vmatpush.bf16.msra.mxu1 %v2407_v63  ;;  %v2379_v8 = vor.u32 %v2612_v5, %v2378_v4  ;;  %v2383_v9 = vor.u32 %v2611_v6, %v2380_v7  ;;  %v2366_v10 = vld [vmem:[%s3186_s21 + $0x60] sm:$0xf]  ;;  %v2609_v11 = vld [vmem:[%s3186_s21 + $0x68] sm:$0xf0]  ;;  %v2608_v12 = vld [vmem:[%s3186_s21 + $0x64] sm:$0xf] }
 0x10c   : > { %v2368_v13 = vld [vmem:[%s3186_s21 + $0x6c] sm:$0xf0]  ;;  %v2354_v14 = vld [vmem:[%s3186_s21 + $0x48] sm:$0xf]  ;;  %v2367_v15 = vor.u32 %v2609_v11, %v2366_v10  ;;  %v2606_v16 = vld [vmem:[%s3186_s21 + $0x50] sm:$0xf0] }
 0x10d   : > { %v2605_v17 = vld [vmem:[%s3186_s21 + $0x4c] sm:$0xf]  ;;  %v2371_v18 = vor.u32 %v2608_v12, %v2368_v13  ;;  %v2356_v19 = vld [vmem:[%s3186_s21 + $0x54] sm:$0xf0]  ;;  %v2355_v20 = vor.u32 %v2606_v16, %v2354_v14  ;;  %v2342_v22 = vld [vmem:[%s3186_s21 + $0x30] sm:$0xf] }
 0x10e   : > { %977 = vmatpush.bf16.msra.mxu0 %v2391_v2  ;;  %v2359_v21 = vor.u32 %v2605_v17, %v2356_v19  ;;  %v2603_v23 = vld [vmem:[%s3186_s21 + $0x38] sm:$0xf0]  ;;  %v2602_v24 = vld [vmem:[%s3186_s21 + $0x34] sm:$0xf]  ;;  %v2344_v25 = vld [vmem:[%s3186_s21 + $0x3c] sm:$0xf0] }
 0x10f   : > { %991 = vmatpush.bf16.msra.mxu1 %v2395_v3  ;;  %v2343_v26 = vor.u32 %v2603_v23, %v2342_v22  ;;  %v2347_v27 = vor.u32 %v2602_v24, %v2344_v25  ;;  %v2330_v28 = vld [vmem:[%s3186_s21 + $0x18] sm:$0xf]  ;;  %v2600_v29 = vld [vmem:[%s3186_s21 + $0x20] sm:$0xf0]  ;;  %v2599_v30 = vld [vmem:[%s3186_s21 + $0x1c] sm:$0xf] }
 0x110   : > { %v2332_v31 = vld [vmem:[%s3186_s21 + $0x24] sm:$0xf0]  ;;  %v2331_v32 = vor.u32 %v2600_v29, %v2330_v28  ;;  %v2318_v34 = vld [vmem:[%s3186_s21] sm:$0xf]  ;;  %v2597_v35 = vld [vmem:[%s3186_s21 + $0x8] sm:$0xf0] }
 0x111   : > { %v2335_v33 = vor.u32 %v2599_v30, %v2332_v31  ;;  %v2596_v36 = vld [vmem:[%s3186_s21 + $0x4] sm:$0xf]  ;;  %v2320_v37 = vld [vmem:[%s3186_s21 + $0xc] sm:$0xf0]  ;;  %v2319_v38 = vor.u32 %v2597_v35, %v2318_v34  ;;  %v3277_v40 = vld [vmem:[#allocation2 + $0x8] sm:$0xff]  ;;  %s3000_s6 = smov 64  }
 0x112   : > { %978 = vmatpush.bf16.msra.mxu0 %v2379_v8  ;;  %v3275_v39 = vld [vmem:[#allocation2] sm:$0xff]  ;;  %v2323_v41 = vor.u32 %v2596_v36, %v2320_v37  ;;  %v2410_v46 = vld [vmem:[%s3186_s21 + $0xb0] sm:$0xf]  ;;  %v2619_v47 = vld [vmem:[%s3186_s21 + $0xb8] sm:$0xf0]  ;;  %vm1110_vm7 = vcmask 261120  }
 0x113   : > { %992 = vmatpush.bf16.msra.mxu1 %v2383_v9  ;;  %v3281_v42 = vpack.c.bf16 %v3277_v40, %v3275_v39  ;;  %v3286_v43 = vld [vmem:[%s3212_s23] sm:$0x7]  ;;  %v2398_v48 = vld [vmem:[%s3186_s21 + $0x98] sm:$0xf]  ;;  %v2411_v49 = vor.u32 %v2619_v47, %v2410_v46  ;;  %v2616_v50 = vld [vmem:[%s3186_s21 + $0xa0] sm:$0xf0] }
 0x114   : > { %v842_v44 = vperm.slane %v3286_v43, 0  ;;  %v843_v45 = vperm.slane %v3286_v43, 1  ;;  %v2399_v54 = vor.u32 %v2616_v50, %v2398_v48  ;;  %v2386_v56 = vld [vmem:[%s3186_s21 + $0x80] sm:$0xf]  ;;  %v2613_v57 = vld [vmem:[%s3186_s21 + $0x88] sm:$0xf0] }
 0x115   : > { %1004 = vmatpush.bf16.msra.mxu2 %v2411_v49  ;;  %v2387_v59 = vor.u32 %v2613_v57, %v2386_v56  ;;  %v2374_v61 = vld [vmem:[%s3186_s21 + $0x68] sm:$0xf]  ;;  %v2610_v62 = vld [vmem:[%s3186_s21 + $0x70] sm:$0xf0]  ;;  %v2362_v2 = vld [vmem:[%s3186_s21 + $0x50] sm:$0xf] }
 0x116   : > { %979 = vmatpush.bf16.msra.mxu0 %v2367_v15  ;;  %v2375_v0 = vor.u32 %v2610_v62, %v2374_v61  ;;  %v2607_v3 = vld [vmem:[%s3186_s21 + $0x58] sm:$0xf0]  ;;  %s3001_s24 = smov 96   ;;  %v2350_v9 = vld [vmem:[%s3186_s21 + $0x38] sm:$0xf]  ;;  %s3002_s20 = smov 32  }
 0x117   : > { %993 = vmatpush.bf16.msra.mxu1 %v2371_v18  ;;  %v2363_v7 = vor.u32 %v2607_v3, %v2362_v2  ;;  %v2604_v10 = vld [vmem:[%s3186_s21 + $0x40] sm:$0xf0]  ;;  %v2338_v14 = vld [vmem:[%s3186_s21 + $0x20] sm:$0xf]  ;;  %v2601_v15 = vld [vmem:[%s3186_s21 + $0x28] sm:$0xf0] }
 0x118   : > { %v2351_v12 = vor.u32 %v2604_v10, %v2350_v9  ;;  %v2339_v16 = vor.u32 %v2601_v15, %v2338_v14  ;;  %v2326_v17 = vld [vmem:[%s3186_s21 + $0x8] sm:$0xf]  ;;  %v2598_v18 = vld [vmem:[%s3186_s21 + $0x10] sm:$0xf0]  ;;  %v2793_v50 = vld [vmem:[%s3184_s11] ss:$0 sm:$0xff] }
 0x119   : > { %1005 = vmatpush.bf16.msra.mxu2 %v2399_v54  ;;  %v2327_v19 = vor.u32 %v2598_v18, %v2326_v17  ;;  %vm1303_vm8 = vcmask 64512   ;;  %v2794_v61 = vld [vmem:[%s3184_s11 + $0x1] ss:$0 sm:$0xff]  ;;  %v844_v62 = vperm.slane %v3286_v43, 2  ;;  %vm1403_vm9 = vcmask 1043456   ;;  %p2588_p5 = scmp.ne.s32.totalorder %s2977_s22, 1 }
 0x11a   : > { %980 = vmatpush.bf16.msra.mxu0 %v2355_v20  ;;  %vm1579_vm10 = vcmask 523264   ;;  %vm1582_vm11 = vcmask 785408  }
 0x11b   : > { %994 = vmatpush.bf16.msra.mxu1 %v2359_v21 }
 0x11d   : > { %1006 = vmatpush.bf16.msra.mxu2 %v2387_v59 }
 0x11e   : > { %981 = vmatpush.bf16.msra.mxu0 %v2343_v26 }
 0x11f   : > { %995 = vmatpush.bf16.msra.mxu1 %v2347_v27 }
 0x121   : > { %1007 = vmatpush.bf16.msra.mxu2 %v2375_v0 }
 0x122   : > { %982 = vmatpush.bf16.msra.mxu0 %v2331_v32 }
 0x123   : > { %996 = vmatpush.bf16.msra.mxu1 %v2335_v33 }
 0x125   : > { %1008 = vmatpush.bf16.msra.mxu2 %v2363_v7 }
 0x126   : > { %983 = vmatpush.bf16.msra.mxu0 %v2319_v38 }
 0x127   : > { %997 = vmatpush.bf16.msra.mxu1 %v2323_v41 }
 0x129   : > { %984 = vmatmul.bf16.vlgmr.msra.gmra.mxu0 %v3281_v42  ;;  %1009 = vmatpush.bf16.msra.mxu2 %v2351_v12 }
 0x12a   : > { %998 = vmatmul.bf16.vlgmr.msra.gmra.mxu1 %v3281_v42 }
 0x12d   : > { %1010 = vmatpush.bf16.msra.mxu2 %v2339_v16  ;;  %v2796_v16 = vld [vmem:[%s3184_s11 + $0x3] ss:$0 sm:$0xff] }
 0x131   : > { %1011 = vmatpush.bf16.msra.mxu2 %v2327_v19  ;;  %v2797_v19 = vld [vmem:[%s3184_s11 + $0x2] ss:$0 sm:$0xff] }
 0x134   : > { %1012 = vmatmul.bf16.vlgmr.msra.gmra.mxu2 %v3281_v42 }
 0x1a6   : > { %v985_v51 = vpop.f32.mrf.mxu0 }
 0x1a7   : > { %v986_v52 = vadd.f32 %v985_v51, %v842_v44  ;;  %v999_v53 = vpop.f32.mrf.mxu1 }
 0x1a8   : > { %v1000_v55 = vadd.f32 %v999_v53, %v843_v45 }
 0x1a9   : > { %1026 = vrot.lane.b32.xlu1 %v986_v52, %s3000_s6  ;;  %v1038_v5 = vpack.c.bf16 %v986_v52, %v986_v52 }
 0x1aa   : > { %1054 = vrot.lane.b32.xlu0 %v1000_v55, %s3000_s6  ;;  %v1066_v58 = vpack.c.bf16 %v1000_v55, %v1000_v55 }
 0x1ac   : > { %v1115_v60 = vsel %vm1110_vm7, %v1066_v58, 0 }
 0x1ad   : > { %1124 = vmatpush.bf16.xpose.msra.mxu3 %v1115_v60 }
 0x1ae   : > { %v987_v11 = vpop.f32.mrf.mxu0 }
 0x1af   : > { %v1001_v63 = vpop.f32.mrf.mxu1  ;;  %v988_v13 = vadd.f32 %v987_v11, %v842_v44  ;;  %v2795_v11 = vld [vmem:[%s3184_s11 + $0x4] ss:$0 sm:$0xff] }
 0x1b0   : > { %v1002_v1 = vadd.f32 %v1001_v63, %v843_v45 }
 0x1b1   : > { %v1039_v20 = vpack.c.bf16 %v988_v13, %v988_v13 }
 0x1b2   : > { %1056 = vrot.lane.b32.xlu2 %v1002_v1, %s3000_s6  ;;  %1048 = vrot.lane.b32.xlu0 %v1000_v55, %s3001_s24  ;;  %v2763_v4 = vpack.i.bf16 %v1002_v1, %v986_v52  ;;  %v1067_v6 = vpack.c.bf16 %v1002_v1, %v1002_v1 }
 0x1b4   : > { %2764 = vrot.lane.b32.xlu1 %v2763_v4, %s3001_s24  ;;  %2412 = vmatmul.msk.bf16.vlgmr.msra.gmra.mxu3 %vm1110_vm7, %v1038_v5  ;;  %v1134_v8 = vsel %vm1110_vm7, %v1067_v6, 0 }
 0x1b5   : > { %1143 = vmatpush.bf16.xpose.msrb.mxu3 %v1134_v8 }
 0x1ba   : > { %1060 = vrot.lane.b32.xlu2 %v1000_v55, %s3002_s20  ;;  %1022 = vrot.lane.b32.xlu0 %v988_v13, %s3001_s24 }
 0x1bc   : > { %1028 = vrot.lane.b32.xlu1 %v988_v13, %s3000_s6 }
 0x1c2   : > { %1062 = vrot.lane.b32.xlu0 %v1002_v1, %s3002_s20  ;;  %1032 = vrot.lane.b32.xlu2 %v986_v52, %s3002_s20  ;;  %v1013_v1 = vpop.f32.mrf.mxu2 }
 0x1c3   : > { %v3340_v3 = vadd.f32 %v1013_v1, %v844_v62 }
 0x1c4   : > { %1034 = vrot.lane.b32.xlu1 %v988_v13, %s3002_s20  ;;  %2413 = vmatmul.msk.bf16.vlgmr.msrb.gmra.mxu3 %vm1110_vm7, %v1039_v20 }
 0x1c5   : > { %v1094_v5 = vpack.c.bf16 %v3340_v3, %v3340_v3 }
 0x1c7   : > { %v1405_v6 = vsel %vm1403_vm9, %v1094_v5, 0 }
 0x1c8   : > { %1414 = vmatpush.bf16.msrb.mxu1 %v1405_v6 }
 0x1ca   : > { %v1015_v7 = vpop.f32.mrf.mxu2 }
 0x1cb   : > { %v3347_v8 = vadd.f32 %v1015_v7, %v844_v62 }
 0x1cd   : > { %v1095_v9 = vpack.c.bf16 %v3347_v8, %v3347_v8 }
 0x1cf   : > { %v1424_v10 = vsel %vm1403_vm9, %v1095_v9, 0 }
 0x20c   : > { %v1057_v21 = vpop.permute.xlu2 %1056 }
 0x20d   : > { %v1071_v22 = vpack.c.bf16 %v1057_v21, %v1057_v21 }
 0x20f   : > { %v1210_v27 = vsel %vm1110_vm7, %v1071_v22, 0 }
 0x214   : > { %v1061_v28 = vpop.permute.xlu2 %1060 }
 0x215   : > { %v1072_v29 = vpack.c.bf16 %v1061_v28, %v1061_v28  ;;  %v2798_v28 = vld [vmem:[%s3184_s11 + $0x5] ss:$0 sm:$0xff] }
 0x217   : > { %v1229_v36 = vsel %vm1110_vm7, %v1072_v29, 0 }
 0x21b   : > { %v1027_v24 = vpop.permute.xlu1 %1026 }
 0x21c   : > { %v1055_v23 = vpop.permute.xlu0 %1054  ;;  %v1042_v31 = vpack.c.bf16 %v1027_v24, %v1027_v24  ;;  %v1033_v54 = vpop.permute.xlu2 %1032 }
 0x21d   : > { %v1070_v25 = vpack.c.bf16 %v1055_v23, %v1055_v23  ;;  %v1044_v57 = vpack.c.bf16 %v1033_v54, %v1033_v54 }
 0x21f   : > { %v1191_v26 = vsel %vm1110_vm7, %v1070_v25, 0 }
 0x220   : > { %1200 = vmatpush.bf16.xpose.msrb.mxu2 %v1191_v26 }
 0x224   : > { %v1049_v30 = vpop.permute.xlu0 %1048 }
 0x225   : > { %v1068_v32 = vpack.c.bf16 %v1049_v30, %v1049_v30 }
 0x226   : > { %v2765_v33 = vpop.permute.xlu1 %2764 }
 0x227   : > { %v1153_v34 = vsel %vm1110_vm7, %v1068_v32, 0  ;;  %v2767_v35 = vunpack.i.h.bf16 %v2765_v33  ;;  %2416 = vmatmul.msk.bf16.vlgmr.msrb.gmra.mxu2 %vm1110_vm7, %v1042_v31  ;;  %v2766_v38 = vunpack.i.l.bf16 %v2765_v33 }
 0x228   : > { %1219 = vmatpush.bf16.xpose.msra.mxu2 %v1210_v27  ;;  %1162 = vmatpush.bf16.xpose.msra.mxu3 %v1153_v34 }
 0x229   : > { %v1069_v37 = vpack.c.bf16 %v2767_v35, %v2767_v35  ;;  %v1040_v44 = vpack.c.bf16 %v2766_v38, %v2766_v38 }
 0x22b   : > { %v1172_v41 = vsel %vm1110_vm7, %v1069_v37, 0 }
 0x22c   : > { %v1023_v42 = vpop.permute.xlu0 %1022  ;;  %1181 = vmatpush.bf16.xpose.msrb.mxu0 %v1172_v41  ;;  %v2800_v41 = vld [vmem:[%s3184_s11 + $0x6] ss:$0 sm:$0xff] }
 0x22d   : > { %v1041_v45 = vpack.c.bf16 %v1023_v42, %v1023_v42 }
 0x22e   : > { %v1029_v46 = vpop.permute.xlu1 %1028 }
 0x22f   : > { %2414 = vmatmul.msk.bf16.vlgmr.msra.gmra.mxu3 %vm1110_vm7, %v1040_v44  ;;  %v1043_v48 = vpack.c.bf16 %v1029_v46, %v1029_v46 }
 0x230   : > { %1238 = vmatpush.bf16.xpose.msrb.mxu3 %v1229_v36  ;;  %1433 = vmatpush.bf16.msrb.mxu2 %v1424_v10  ;;  %v2799_v36 = vld [vmem:[%s3184_s11 + $0x7] ss:$0 sm:$0xff] }
 0x233   : > { %2415 = vmatmul.msk.bf16.vlgmr.msrb.gmra.mxu0 %vm1110_vm7, %v1041_v45 }
 0x234   : > { %v1063_v47 = vpop.permute.xlu0 %1062 }
 0x235   : > { %v1073_v49 = vpack.c.bf16 %v1063_v47, %v1063_v47 }
 0x236   : > { %v1035_v58 = vpop.permute.xlu1 %1034 }
 0x237   : > { %v1248_v51 = vsel %vm1110_vm7, %v1073_v49, 0  ;;  %v1126_v52 = vpop.f32.mrf.mxu3  ;;  %2417 = vmatmul.msk.bf16.vlgmr.msra.gmra.mxu2 %vm1110_vm7, %v1043_v48  ;;  %v1045_v60 = vpack.c.bf16 %v1035_v58, %v1035_v58 }
 0x238   : > { %v1263_v53 = vmul.f32 0.17677669, %v1126_v52  ;;  %1257 = vmatpush.bf16.xpose.msra.mxu0 %v1248_v51 }
 0x23a   : > { %v1295_v55 = vadd.f32 %v2793_v50, %v1263_v53 }
 0x23c   : > { %v1304_v56 = vsel %vm1303_vm8, %v1295_v55, -inf }
 0x23d   : > { %1305 = vmax.xlane.f32.xlu1 %v1304_v56 }
 0x23f   : > { %v1128_v59 = vpop.f32.mrf.mxu3  ;;  %2418 = vmatmul.msk.bf16.vlgmr.msrb.gmra.mxu3 %vm1110_vm7, %v1044_v57 }
 0x243   : > { %2419 = vmatmul.msk.bf16.vlgmr.msra.gmra.mxu0 %vm1110_vm7, %v1045_v60 }
 0x247   : > { %v1145_v63 = vpop.f32.mrf.mxu3 }
 0x248   : > { %v1264_v0 = vmul.f32 0.17677669, %v1145_v63 }
 0x24a   : > { %v3338_v2 = vadd.f32 %v2794_v61, %v1264_v0 }
 0x24c   : > { %v1307_v4 = vsel %vm1303_vm8, %v3338_v2, -inf }
 0x24d   : > { %1308 = vmax.xlane.f32.xlu2 %v1307_v4 }
 0x24f   : > { %v1147_v43 = vpop.f32.mrf.mxu3 }
 0x2aa   : > { %v1202_v12 = vpop.f32.mrf.mxu2 }
 0x2ab   : > { %v1267_v13 = vmul.f32 0.17677669, %v1202_v12 }
 0x2ad   : > { %v3353_v14 = vadd.f32 %v2795_v11, %v1267_v13 }
 0x2af   : > { %v1316_v15 = vsel %vm1303_vm8, %v3353_v14, -inf }
 0x2b0   : > { %v1183_v17 = vpop.f32.mrf.mxu0  ;;  %1317 = vmax.xlane.f32.xlu1 %v1316_v15  ;;  %v1306_v31 = vpop.xlane.xlu1 %1305 }
 0x2b1   : > { %v1266_v18 = vmul.f32 0.17677669, %v1183_v17  ;;  %v1328_v34 = vsub.f32 %v1295_v55, %v1306_v31  ;;  %v2768_v55 = vpack.i.bf16 %v3347_v8, %v3340_v3 }
 0x2b2   : > { %v1164_v20 = vpop.f32.mrf.mxu3  ;;  %v1204_v21 = vpop.f32.mrf.mxu2 }
 0x2b3   : > { %v1265_v22 = vmul.f32 0.17677669, %v1164_v20  ;;  %v1298_v23 = vadd.f32 %v2796_v16, %v1266_v18  ;;  %v1336_v42 = vmul.f32 1.442695, %v1328_v34 }
 0x2b5   : > { %v1313_v24 = vsel %vm1303_vm8, %v1298_v23, -inf  ;;  %v1297_v25 = vadd.f32 %v2797_v19, %v1265_v22  ;;  %2801 = vpow2.f32 %v1336_v42 }
 0x2b6   : > { %1314 = vmax.xlane.f32.xlu2 %v1313_v24 }
 0x2b7   : > { %v1310_v26 = vsel %vm1303_vm8, %v1297_v25, -inf }
 0x2b8   : > { %v1185_v27 = vpop.f32.mrf.mxu0  ;;  %1311 = vmax.xlane.f32.xlu0 %v1310_v26 }
 0x2ba   : > { %v1166_v29 = vpop.f32.mrf.mxu3  ;;  %v1221_v30 = vpop.f32.mrf.mxu2 }
 0x2bb   : > { %v1268_v32 = vmul.f32 0.17677669, %v1221_v30  ;;  %v2802_v53 = vpop.eup %2801 }
 0x2bc   : > { %v1352_v54 = vsel %vm1303_vm8, %v2802_v53, 0.0 }
 0x2bd   : > { %v1300_v33 = vadd.f32 %v2798_v28, %v1268_v32 }
 0x2bf   : > { %v1319_v35 = vsel %vm1303_vm8, %v1300_v33, -inf }
 0x2c0   : > { %v1259_v37 = vpop.f32.mrf.mxu0  ;;  %1320 = vmax.xlane.f32.xlu2 %v1319_v35  ;;  %v1309_v56 = vpop.xlane.xlu2 %1308 }
 0x2c1   : > { %v1270_v38 = vmul.f32 0.17677669, %v1259_v37  ;;  %v1329_v57 = vsub.f32 %v3338_v2, %v1309_v56 }
 0x2c2   : > { %v1223_v44 = vpop.f32.mrf.mxu2  ;;  %v1240_v45 = vpop.f32.mrf.mxu3 }
 0x2c3   : > { %v1269_v46 = vmul.f32 0.17677669, %v1240_v45  ;;  %v1302_v47 = vadd.f32 %v2799_v36, %v1270_v38  ;;  %v1338_v58 = vmul.f32 1.442695, %v1329_v57  ;;  %v2773_v38 = vpack.i.bf16 %v3340_v3, %v3347_v8 }
 0x2c5   : > { %v1301_v48 = vadd.f32 %v2800_v41, %v1269_v46  ;;  %v1325_v49 = vsel %vm1303_vm8, %v1302_v47, -inf  ;;  %2803 = vpow2.f32 %v1338_v58 }
 0x2c7   : > { %v1322_v50 = vsel %vm1303_vm8, %v1301_v48, -inf }
 0x2c8   : > { %v1261_v51 = vpop.f32.mrf.mxu0  ;;  %1326 = vmax.xlane.f32.xlu2 %v1325_v49  ;;  %1323 = vmax.xlane.f32.xlu0 %v1322_v50 }
 0x2ca   : > { %v1242_v52 = vpop.f32.mrf.mxu3 }
 0x2cb   : > { %v3372_v59 = vpop.eup %2803 }
 0x2cc   : > { %v1355_v60 = vsel %vm1303_vm8, %v3372_v59, 0.0 }
 0x2d0   : > { %1353 = vadd.xlane.f32.xlu2 %v1352_v54 }
 0x2dc   : > { %2769 = vrot.lane.b32.xlu0 %v2768_v55, %s3001_s24 }
 0x306   : > { %1356 = vadd.xlane.f32.xlu0 %v1355_v60 }
 0x31a   : > { %1088 = vrot.lane.b32.xlu0 %v3340_v3, %s3002_s20 }
 0x322   : > { %1090 = vrot.lane.b32.xlu0 %v3347_v8, %s3002_s20 }
 0x323   : > { %v1318_v4 = vpop.xlane.xlu1 %1317 }
 0x324   : > { %v1332_v7 = vsub.f32 %v3353_v14, %v1318_v4 }
 0x326   : > { %v1344_v11 = vmul.f32 1.442695, %v1332_v7 }
 0x329   : > { %v1315_v61 = vpop.xlane.xlu2 %1314 }
 0x32a   : > { %v1331_v0 = vsub.f32 %v1298_v23, %v1315_v61 }
 0x32b   : > { %v1312_v62 = vpop.xlane.xlu0 %1311 }
 0x32c   : > { %v1330_v63 = vsub.f32 %v1297_v25, %v1312_v62  ;;  %v1342_v2 = vmul.f32 1.442695, %v1331_v0 }
 0x32e   : > { %v1340_v1 = vmul.f32 1.442695, %v1330_v63 }
 0x330   : > { %2805 = vpow2.f32 %v1340_v1 }
 0x331   : > { %2807 = vpow2.f32 %v1342_v2 }
 0x333   : > { %v1321_v5 = vpop.xlane.xlu2 %1320 }
 0x334   : > { %v1333_v6 = vsub.f32 %v1300_v33, %v1321_v5 }
 0x336   : > { %v3380_v43 = vpop.eup %2805  ;;  %v1346_v9 = vmul.f32 1.442695, %v1333_v6 }
 0x337   : > { %v1358_v10 = vsel %vm1303_vm8, %v3380_v43, 0.0  ;;  %v3385_v15 = vpop.eup %2807 }
 0x338   : > { %2809 = vpow2.f32 %v1346_v9  ;;  %1359 = vadd.xlane.f32.xlu1 %v1358_v10  ;;  %v1361_v14 = vsel %vm1303_vm8, %v3385_v15, 0.0 }
 0x339   : > { %2811 = vpow2.f32 %v1344_v11 }
 0x33b   : > { %v1327_v12 = vpop.xlane.xlu2 %1326  ;;  %v1324_v13 = vpop.xlane.xlu0 %1323 }
 0x33c   : > { %v1334_v17 = vsub.f32 %v1301_v48, %v1324_v13  ;;  %v1335_v22 = vsub.f32 %v1302_v47, %v1327_v12 }
 0x33e   : > { %v3387_v16 = vpop.eup %2809  ;;  %v1348_v19 = vmul.f32 1.442695, %v1334_v17  ;;  %v1350_v25 = vmul.f32 1.442695, %v1335_v22 }
 0x33f   : > { %v1367_v18 = vsel %vm1303_vm8, %v3387_v16, 0.0  ;;  %v3393_v21 = vpop.eup %2811 }
 0x340   : > { %1368 = vadd.xlane.f32.xlu2 %v1367_v18  ;;  %1362 = vadd.xlane.f32.xlu1 %v1361_v14  ;;  %v1364_v23 = vsel %vm1303_vm8, %v3393_v21, 0.0 }
 0x343   : > { %v1354_v20 = vpop.xlane.xlu2 %1353 }
 0x344   : > { %2813 = vrcp.f32 %v1354_v20 }
 0x345   : > { %2815 = vpow2.f32 %v1348_v19 }
 0x346   : > { %2817 = vpow2.f32 %v1350_v25 }
 0x348   : > { %1365 = vadd.xlane.f32.xlu1 %v1364_v23 }
 0x34a   : > { %v2814_v24 = vpop.eup %2813 }
 0x34b   : > { %v1384_v26 = vmul.f32 %v2814_v24, %v2802_v53  ;;  %v3397_v27 = vpop.eup %2815  ;;  %v2627_v24 = vld [vmem:[%s3192_s12 + $0x38] sm:$0xff] }
 0x34c   : > { %v1370_v32 = vsel %vm1303_vm8, %v3397_v27, 0.0  ;;  %v3404_v37 = vpop.eup %2817 }
 0x34d   : > { %v1392_v28 = vpack.c.bf16 %v1384_v26, %v1384_v26  ;;  %v1373_v41 = vsel %vm1303_vm8, %v3404_v37, 0.0 }
 0x34e   : > { %v2770_v29 = vpop.permute.xlu0 %2769 }
 0x34f   : > { %v2772_v30 = vunpack.i.h.bf16 %v2770_v29  ;;  %v2771_v31 = vunpack.i.l.bf16 %v2770_v29  ;;  %2420 = vmatmul.msk.bf16.vlgmr.msrb.gmra.mxu1 %vm1303_vm8, %v1392_v28  ;;  %v2625_v29 = vld [vmem:[%s3192_s12 + $0x28] sm:$0xff] }
 0x350   : > { %1371 = vadd.xlane.f32.xlu1 %v1370_v32  ;;  %v2624_v32 = vld [vmem:[%s3192_s12 + $0x20] sm:$0xff] }
 0x351   : > { %v1097_v33 = vpack.c.bf16 %v2772_v30, %v2772_v30  ;;  %v1096_v34 = vpack.c.bf16 %v2771_v31, %v2771_v31 }
 0x353   : > { %v1443_v35 = vsel %vm1403_vm9, %v1096_v34, 0  ;;  %v1462_v36 = vsel %vm1403_vm9, %v1097_v33, 0 }
 0x354   : > { %1452 = vmatpush.bf16.msra.mxu3 %v1443_v35  ;;  %1471 = vmatpush.bf16.msrb.mxu0 %v1462_v36 }
 0x358   : > { %2774 = vrot.lane.b32.xlu2 %v2773_v38, %s3000_s6  ;;  %1374 = vadd.xlane.f32.xlu1 %v1373_v41 }
 0x379   : > { %v1357_v42 = vpop.xlane.xlu0 %1356 }
 0x37a   : > { %2819 = vrcp.f32 %v1357_v42 }
 0x380   : > { %v2820_v44 = vpop.eup %2819 }
 0x381   : > { %v1385_v45 = vmul.f32 %v2820_v44, %v3372_v59 }
 0x383   : > { %v1393_v46 = vpack.c.bf16 %v1385_v45, %v1385_v45  ;;  %v2623_v45 = vld [vmem:[%s3192_s12 + $0x18] sm:$0xff] }
 0x385   : > { %2421 = vmatmul.msk.bf16.vlgmr.msrb.gmra.mxu2 %vm1303_vm8, %v1393_v46  ;;  %v2622_v46 = vld [vmem:[%s3192_s12 + $0x10] sm:$0xff] }
 0x38c   : > { %v1089_v47 = vpop.permute.xlu0 %1088 }
 0x38d   : > { %v1100_v48 = vpack.c.bf16 %v1089_v47, %v1089_v47  ;;  %v2621_v47 = vld [vmem:[%s3192_s12 + $0x8] sm:$0xff] }
 0x38f   : > { %v1519_v49 = vsel %vm1403_vm9, %v1100_v48, 0  ;;  %v2620_v48 = vld [vmem:[%s3192_s12] sm:$0xff] }
 0x390   : > { %1528 = vmatpush.bf16.msrb.mxu3 %v1519_v49 }
 0x394   : > { %v1091_v3 = vpop.permute.xlu0 %1090 }
 0x395   : > { %v1101_v8 = vpack.c.bf16 %v1091_v3, %v1091_v3 }
 0x397   : > { %v1538_v50 = vsel %vm1403_vm9, %v1101_v8, 0 }
 0x398   : > { %1547 = vmatpush.bf16.msra.mxu0 %v1538_v50 }
 0x3ab   : > { %v1360_v51 = vpop.xlane.xlu1 %1359 }
 0x3ac   : > { %2821 = vrcp.f32 %v1360_v51 }
 0x3b2   : > { %v2822_v52 = vpop.eup %2821 }
 0x3b3   : > { %v1386_v53 = vmul.f32 %v2822_v52, %v3380_v43  ;;  %v1369_v54 = vpop.xlane.xlu2 %1368  ;;  %v1363_v55 = vpop.xlane.xlu1 %1362 }
 0x3b4   : > { %2823 = vrcp.f32 %v1369_v54 }
 0x3b5   : > { %v1394_v56 = vpack.c.bf16 %v1386_v53, %v1386_v53  ;;  %2825 = vrcp.f32 %v1363_v55 }
 0x3b7   : > { %2422 = vmatmul.msk.bf16.vlgmr.msra.gmra.mxu3 %vm1303_vm8, %v1394_v56 }
 0x3ba   : > { %v2824_v57 = vpop.eup %2823 }
 0x3bb   : > { %v2826_v58 = vpop.eup %2825  ;;  %v2775_v59 = vpop.permute.xlu2 %2774  ;;  %v1389_v0 = vmul.f32 %v2824_v57, %v3387_v16 }
 0x3bc   : > { %v1366_v60 = vpop.xlane.xlu1 %1365  ;;  %v1387_v61 = vmul.f32 %v2826_v58, %v3385_v15  ;;  %v2777_v62 = vunpack.i.h.bf16 %v2775_v59  ;;  %v2776_v63 = vunpack.i.l.bf16 %v2775_v59 }
 0x3bd   : > { %2827 = vrcp.f32 %v1366_v60  ;;  %v1397_v7 = vpack.c.bf16 %v1389_v0, %v1389_v0 }
 0x3be   : > { %v1395_v1 = vpack.c.bf16 %v1387_v61, %v1387_v61  ;;  %v1098_v2 = vpack.c.bf16 %v2777_v62, %v2777_v62  ;;  %v1099_v4 = vpack.c.bf16 %v2776_v63, %v2776_v63  ;;  %v3443_v63 = vld [vmem:[%s3227_s1] sm:$0x3f] }
 0x3bf   : > { %v1586_v0 = vperm.slane %v3443_v63, 0 }
 0x3c0   : > { %2423 = vmatmul.msk.bf16.vlgmr.msrb.gmra.mxu0 %vm1303_vm8, %v1395_v1  ;;  %v1481_v5 = vsel %vm1403_vm9, %v1098_v2, 0  ;;  %v1500_v6 = vsel %vm1403_vm9, %v1099_v4, 0 }
 0x3c1   : > { %1490 = vmatpush.bf16.msra.mxu1 %v1481_v5  ;;  %1509 = vmatpush.bf16.msra.mxu2 %v1500_v6 }
 0x3c3   : > { %v2828_v43 = vpop.eup %2827 }
 0x3c4   : > { %v1388_v9 = vmul.f32 %v2828_v43, %v3393_v21  ;;  %v1372_v10 = vpop.xlane.xlu1 %1371  ;;  %2425 = vmatmul.msk.bf16.vlgmr.msra.gmra.mxu2 %vm1303_vm8, %v1397_v7 }
 0x3c5   : > { %2829 = vrcp.f32 %v1372_v10  ;;  %1635 = vmatpush.bf16.msrb.mxu1 %v2627_v24  ;;  %v2502_v24 = vld [vmem:[%s3217_s3 + $0x50] sm:$0xf] }
 0x3c6   : > { %v1396_v11 = vpack.c.bf16 %v1388_v9, %v1388_v9  ;;  %v3003_v9 = vmov 128.0  }
 0x3c8   : > { %2424 = vmatmul.msk.bf16.vlgmr.msra.gmra.mxu1 %vm1303_vm8, %v1396_v11  ;;  %v2518_v11 = vld [vmem:[%s3217_s3 + $0x70] sm:$0xf] }
 0x3cb   : > { %v2830_v12 = vpop.eup %2829 }
 0x3cc   : > { %v1390_v13 = vmul.f32 %v2830_v12, %v3397_v27  ;;  %v1375_v15 = vpop.xlane.xlu1 %1374  ;;  %v1416_v16 = vpop.f32.mrf.mxu1  ;;  %v2626_v27 = vld [vmem:[%s3192_s12 + $0x30] sm:$0xff]  ;;  %v2643_v12 = vld [vmem:[%s3217_s3 + $0x74] sm:$0xf0] }
 0x3cd   : > { %2831 = vrcp.f32 %v1375_v15  ;;  %1636 = vmatpush.bf16.msrb.mxu1 %v2626_v27  ;;  %v2519_v15 = vor.u32 %v2643_v12, %v2518_v11 }
 0x3ce   : > { %v1398_v17 = vpack.c.bf16 %v1390_v13, %v1390_v13  ;;  %2833 = vrcp.f32 %v3003_v9  ;;  %v2642_v13 = vld [vmem:[%s3217_s3 + $0x74] sm:$0xf] }
 0x3cf   : > { %1796 = vmatpush.bf16.msrb.mxu2 %v2519_v15 }
 0x3d0   : > { %2426 = vmatmul.msk.bf16.vlgmr.msrb.gmra.mxu3 %vm1303_vm8, %v1398_v17 }
 0x3d1   : > { %1637 = vmatpush.bf16.msrb.mxu1 %v2625_v29 }
 0x3d3   : > { %v2832_v18 = vpop.eup %2831 }
 0x3d4   : > { %v1391_v14 = vmul.f32 %v2832_v18, %v3404_v37  ;;  %v1418_v19 = vpop.f32.mrf.mxu1  ;;  %v2834_v10 = vpop.eup %2833  ;;  %v2510_v18 = vld [vmem:[%s3217_s3 + $0x60] sm:$0xf] }
 0x3d5   : > { %1638 = vmatpush.bf16.msrb.mxu1 %v2624_v32  ;;  %v2640_v19 = vld [vmem:[%s3217_s3 + $0x64] sm:$0xf]  ;;  %v2637_v32 = vld [vmem:[%s3217_s3 + $0x44] sm:$0xf0]  ;;  %vm1660_vm12 = vweird.f32 %v2834_v10 }
 0x3d6   : > { %v1399_v20 = vpack.c.bf16 %v1391_v14, %v1391_v14  ;;  %v2641_v14 = vld [vmem:[%s3217_s3 + $0x64] sm:$0xf0] }
 0x3d8   : > { %2427 = vmatmul.msk.bf16.vlgmr.msra.gmra.mxu0 %vm1303_vm8, %v1399_v20  ;;  %v2511_v20 = vor.u32 %v2641_v14, %v2510_v18 }
 0x3d9   : > { %1639 = vmatpush.bf16.msrb.mxu1 %v2623_v45  ;;  %v2488_v45 = vld [vmem:[%s3217_s3 + $0x38] sm:$0xf0] }
 0x3da   : > { %1797 = vmatpush.bf16.msrb.mxu2 %v2511_v20 }
 0x3dd   : > { %1640 = vmatpush.bf16.msrb.mxu1 %v2622_v46 }
 0x3e1   : > { %1641 = vmatpush.bf16.msrb.mxu1 %v2621_v47 }
 0x3e5   : > { %1642 = vmatpush.bf16.msrb.mxu1 %v2620_v48 }
 0x408   : > { %v1435_v21 = vpop.f32.mrf.mxu2 }
 0x410   : > { %v1437_v22 = vpop.f32.mrf.mxu2 }
 0x43a   : > { %v1454_v23 = vpop.f32.mrf.mxu3 }
 0x43d   : > { %v1473_v25 = vpop.f32.mrf.mxu0 }
 0x43e   : > { %v2778_v26 = vpack.i.bf16 %v1473_v25, %v1454_v23  ;;  %v2639_v25 = vld [vmem:[%s3217_s3 + $0x54] sm:$0xf0] }
 0x43f   : > { %v2503_v27 = vor.u32 %v2639_v25, %v2502_v24 }
 0x440   : > { %2779 = vrot.lane.b32.xlu1 %v2778_v26, %s3002_s20  ;;  %v2638_v26 = vld [vmem:[%s3217_s3 + $0x54] sm:$0xf] }
 0x441   : > { %1798 = vmatpush.bf16.msrb.mxu2 %v2503_v27 }
 0x442   : > { %v1456_v28 = vpop.f32.mrf.mxu3 }
 0x443   : > { %v2504_v28 = vld [vmem:[%s3217_s3 + $0x58] sm:$0xf0] }
 0x445   : > { %v1492_v30 = vpop.f32.mrf.mxu1  ;;  %v1475_v31 = vpop.f32.mrf.mxu0 }
 0x446   : > { %v2494_v31 = vld [vmem:[%s3217_s3 + $0x40] sm:$0xf] }
 0x447   : > { %v1511_v33 = vpop.f32.mrf.mxu2 }
 0x448   : > { %v2783_v34 = vpack.i.bf16 %v1511_v33, %v1492_v30  ;;  %v2507_v30 = vor.u32 %v2638_v26, %v2504_v28  ;;  %v2636_v33 = vld [vmem:[%s3217_s3 + $0x44] sm:$0xf] }
 0x44a   : > { %2784 = vrot.lane.b32.xlu0 %v2783_v34, %s3000_s6  ;;  %v2495_v34 = vor.u32 %v2637_v32, %v2494_v31  ;;  %v1704_v32 = vperm.slane %v3443_v63, 1 }
 0x44c   : > { %1799 = vmatpush.bf16.msrb.mxu2 %v2495_v34 }
 0x44d   : > { %v1494_v35 = vpop.f32.mrf.mxu1 }
 0x44e   : > { %v2496_v35 = vld [vmem:[%s3217_s3 + $0x48] sm:$0xf0] }
 0x44f   : > { %v1513_v36 = vpop.f32.mrf.mxu2 }
 0x453   : > { %v1530_v37 = vpop.f32.mrf.mxu3 }
 0x455   : > { %v1549_v38 = vpop.f32.mrf.mxu0 }
 0x456   : > { %v2788_v41 = vpack.i.bf16 %v1549_v38, %v1530_v37  ;;  %v2499_v37 = vor.u32 %v2636_v33, %v2496_v35  ;;  %v2486_v38 = vld [vmem:[%s3217_s3 + $0x30] sm:$0xf] }
 0x458   : > { %2789 = vrot.lane.b32.xlu2 %v2788_v41, %s3001_s24  ;;  %v2635_v41 = vld [vmem:[%s3217_s3 + $0x34] sm:$0xf0] }
 0x45b   : > { %v1532_v42 = vpop.f32.mrf.mxu3 }
 0x45c   : > { %v2634_v42 = vld [vmem:[%s3217_s3 + $0x34] sm:$0xf] }
 0x45d   : > { %v1551_v44 = vpop.f32.mrf.mxu0  ;;  %v2491_v47 = vor.u32 %v2634_v42, %v2488_v45  ;;  %v2659_v45 = vld [vmem:[%s3222_s14 + $0x78] sm:$0xff] }
 0x45e   : > { %v2487_v44 = vor.u32 %v2635_v41, %v2486_v38  ;;  %1973 = vmatpush.bf16.msra.mxu1 %v2659_v45 }
 0x460   : > { %1800 = vmatpush.bf16.msrb.mxu2 %v2487_v44 }
 0x4b2   : > { %v2780_v49 = vpop.permute.xlu1 %2779  ;;  %v2790_v50 = vpop.permute.xlu2 %2789 }
 0x4b3   : > { %v2782_v3 = vunpack.i.h.bf16 %v2780_v49  ;;  %v2781_v8 = vunpack.i.l.bf16 %v2780_v49  ;;  %v2792_v56 = vunpack.i.h.bf16 %v2790_v50  ;;  %v2791_v57 = vunpack.i.l.bf16 %v2790_v50  ;;  %v2478_v49 = vld [vmem:[%s3217_s3 + $0x20] sm:$0xf] }
 0x4b5   : > { %v1578_v54 = vsel %vm1110_vm7, %v1435_v21, %v2782_v3  ;;  %v1577_v55 = vsel %vm1110_vm7, %v1416_v16, %v2781_v8  ;;  %v1656_v16 = vmul.f32 128.0, %v2834_v10  ;;  %v2512_v21 = vld [vmem:[%s3217_s3 + $0x68] sm:$0xf0]  ;;  %v2633_v3 = vld [vmem:[%s3217_s3 + $0x24] sm:$0xf0] }
 0x4b6   : > { %v2515_v23 = vor.u32 %v2640_v19, %v2512_v21  ;;  %v2632_v8 = vld [vmem:[%s3217_s3 + $0x24] sm:$0xf] }
 0x4b7   : > { %v1657_v22 = vsub.f32 1.0, %v1656_v16 }
 0x4b9   : > { %v1658_v29 = vmul.f32 %v2834_v10, %v1657_v22 }
 0x4bb   : > { %v1659_v36 = vadd.f32 %v2834_v10, %v1658_v29 }
 0x4bc   : > { %v2785_v51 = vpop.permute.xlu0 %2784 }
 0x4bd   : > { %v2787_v52 = vunpack.i.h.bf16 %v2785_v51  ;;  %v2786_v53 = vunpack.i.l.bf16 %v2785_v51  ;;  %v3478_v46 = vsel %vm1660_vm12, %v2834_v10, %v1659_v36  ;;  %v2479_v51 = vor.u32 %v2633_v3, %v2478_v49  ;;  %v2649_v49 = vld [vmem:[%s3222_s14 + $0x28] sm:$0xff] }
 0x4be   : > { %v2657_v3 = vld [vmem:[%s3222_s14 + $0x68] sm:$0xff] }
 0x4bf   : > { %v1580_v58 = vsel %vm1579_vm10, %v1577_v55, %v2786_v53  ;;  %v1581_v59 = vsel %vm1579_vm10, %v1578_v54, %v2787_v52  ;;  %v2480_v52 = vld [vmem:[%s3217_s3 + $0x28] sm:$0xf0]  ;;  %1801 = vmatpush.bf16.msrb.mxu2 %v2479_v51  ;;  %v2647_v51 = vld [vmem:[%s3222_s14 + $0x18] sm:$0xff] }
 0x4c0   : > { %v1583_v60 = vsel %vm1582_vm11, %v1580_v58, %v2791_v57  ;;  %v1584_v61 = vsel %vm1582_vm11, %v1581_v59, %v2792_v56  ;;  %v2483_v54 = vor.u32 %v2632_v8, %v2480_v52  ;;  %v2470_v57 = vld [vmem:[%s3217_s3 + $0x10] sm:$0xf]  ;;  %v2631_v58 = vld [vmem:[%s3217_s3 + $0x14] sm:$0xf0]  ;;  %v2630_v59 = vld [vmem:[%s3217_s3 + $0x14] sm:$0xf] }
 0x4c1   : > { %v1585_v62 = vpack.c.bf16 %v1584_v61, %v1583_v60  ;;  %v2471_v61 = vor.u32 %v2631_v58, %v2470_v57  ;;  %v2648_v8 = vld [vmem:[%s3222_s14 + $0x20] sm:$0xff]  ;;  %v2655_v52 = vld [vmem:[%s3222_s14 + $0x58] sm:$0xff]  ;;  %v2653_v57 = vld [vmem:[%s3222_s14 + $0x48] sm:$0xff] }
 0x4c3   : > { %1643 = vmatmul.bf16.vlgmr.msrb.gmra.mxu1 %v1585_v62  ;;  %v2472_v62 = vld [vmem:[%s3217_s3 + $0x18] sm:$0xf0]  ;;  %1802 = vmatpush.bf16.msrb.mxu2 %v2471_v61 }
 0x540   : > { %v1644_v1 = vpop.f32.mrf.mxu1 }
 0x541   : > { %v1645_v2 = vadd.f32 %v1644_v1, %v1586_v0  ;;  %v2462_v1 = vld [vmem:[%s3217_s3] sm:$0xf] }
 0x543   : > { %v3447_v4 = vadd.f32 %v1645_v2, %v3275_v39  ;;  %v2629_v2 = vld [vmem:[%s3217_s3 + $0x4] sm:$0xf0] }
 0x545   : > { %1651 = vadd.xlane.f32.xlu0 %v3447_v4  ;;  %v1664_v5 = vmul.f32 %v3447_v4, %v3447_v4 }
 0x547   : > { %1666 = vadd.xlane.f32.xlu1 %v1664_v5  ;;  %v2628_v5 = vld [vmem:[%s3217_s3 + $0x4] sm:$0xf] }
 0x548   : > { %v1646_v6 = vpop.f32.mrf.mxu1 }
 0x549   : > { %v1647_v43 = vadd.f32 %v1646_v6, %v1586_v0  ;;  %v2475_v0 = vor.u32 %v2630_v59, %v2472_v62  ;;  %v2644_v62 = vld [vmem:[%s3222_s14] sm:$0xff] }
 0x54b   : > { %v3453_v7 = vadd.f32 %v1647_v43, %v3277_v40  ;;  %v2520_v40 = vld [vmem:[%s3217_s3 + $0x78] sm:$0xf0]  ;;  %v2463_v43 = vor.u32 %v2629_v2, %v2462_v1 }
 0x54c   : > { %v2523_v17 = vor.u32 %v2642_v13, %v2520_v40 }
 0x54d   : > { %1653 = vadd.xlane.f32.xlu2 %v3453_v7  ;;  %v1665_v39 = vmul.f32 %v3453_v7, %v3453_v7  ;;  %1803 = vmatpush.bf16.msrb.mxu2 %v2463_v43 }
 0x54e   : > { %1810 = vmatpush.bf16.msra.mxu3 %v2523_v17 }
 0x54f   : > { %1668 = vadd.xlane.f32.xlu0 %v1665_v39  ;;  %v2464_v39 = vld [vmem:[%s3217_s3 + $0x8] sm:$0xf0] }
 0x550   : > { %v2467_v10 = vor.u32 %v2628_v5, %v2464_v39 }
 0x552   : > { %1811 = vmatpush.bf16.msra.mxu3 %v2515_v23 }
 0x556   : > { %1812 = vmatpush.bf16.msra.mxu3 %v2507_v30 }
 0x55a   : > { %1813 = vmatpush.bf16.msra.mxu3 %v2499_v37 }
 0x55e   : > { %1814 = vmatpush.bf16.msra.mxu3 %v2491_v47  ;;  %v2650_v47 = vld [vmem:[%s3222_s14 + $0x30] sm:$0xff] }
 0x562   : > { %1815 = vmatpush.bf16.msra.mxu3 %v2483_v54  ;;  %v2654_v54 = vld [vmem:[%s3222_s14 + $0x50] sm:$0xff] }
 0x566   : > { %1816 = vmatpush.bf16.msra.mxu3 %v2475_v0  ;;  %v2652_v0 = vld [vmem:[%s3222_s14 + $0x40] sm:$0xff] }
 0x56a   : > { %1817 = vmatpush.bf16.msra.mxu3 %v2467_v10 }
 0x5b8   : > { %v1652_v48 = vpop.xlane.xlu0 %1651 }
 0x5b9   : > { %v1662_v50 = vmul.f32 %v3478_v46, %v1652_v48  ;;  %v2658_v48 = vld [vmem:[%s3222_s14 + $0x70] sm:$0xff] }
 0x5ba   : > { %v1667_v53 = vpop.xlane.xlu1 %1666  ;;  %1974 = vmatpush.bf16.msra.mxu1 %v2658_v48 }
 0x5bb   : > { %v1672_v55 = vmul.f32 %v1662_v50, %v1662_v50  ;;  %v1670_v56 = vmul.f32 %v1667_v53, %v3478_v46  ;;  %v1678_v29 = vsub.f32 %v3447_v4, %v1662_v50  ;;  %v1707_v4 = vperm.slane %v3443_v63, 2  ;;  %v2656_v50 = vld [vmem:[%s3222_s14 + $0x60] sm:$0xff]  ;;  %v2646_v53 = vld [vmem:[%s3222_s14 + $0x10] sm:$0xff] }
 0x5bd   : > { %v1674_v60 = vsub.f32 %v1670_v56, %v1672_v55  ;;  %v839_v55 = vld [vmem:[%s3232_s0] sm:$0x3]  ;;  %v2645_v56 = vld [vmem:[%s3222_s14 + $0x8] sm:$0xff] }
 0x5be   : > { %1975 = vmatpush.bf16.msra.mxu1 %v2657_v3  ;;  %v1712_v58 = vperm.slane %v839_v55, 0  ;;  %v1713_v59 = vperm.slane %v839_v55, 1  ;;  %v1862_v3 = vperm.slane %v3443_v63, 3 }
 0x5bf   : > { %v1676_v6 = vmax.f32 %v1674_v60, 0.0 }
 0x5c0   : > { %v1654_v9 = vpop.xlane.xlu2 %1653 }
 0x5c1   : > { %v1680_v11 = vadd.f32 1e-12, %v1676_v6  ;;  %v1663_v12 = vmul.f32 %v3478_v46, %v1654_v9 }
 0x5c2   : > { %v1669_v13 = vpop.xlane.xlu0 %1668  ;;  %1976 = vmatpush.bf16.msra.mxu1 %v2656_v50 }
 0x5c3   : > { %2835 = vrsqrt.f32 %v1680_v11  ;;  %v1673_v15 = vmul.f32 %v1663_v12, %v1663_v12  ;;  %v1671_v40 = vmul.f32 %v1669_v13, %v3478_v46  ;;  %vm1688_vm14 = vweird.f32 %v1680_v11 }
 0x5c4   : > { %v1679_v34 = vsub.f32 %v3453_v7, %v1663_v12  ;;  %v2651_v7 = vld [vmem:[%s3222_s14 + $0x38] sm:$0xff] }
 0x5c5   : > { %v1675_v16 = vsub.f32 %v1671_v40, %v1673_v15  ;;  %1959 = vmatpush.bf16.msrb.mxu0 %v2651_v7 }
 0x5c6   : > { %1977 = vmatpush.bf16.msra.mxu1 %v2655_v52 }
 0x5c7   : > { %v1677_v17 = vmax.f32 %v1675_v16, 0.0 }
 0x5c9   : > { %v2836_v18 = vpop.eup %2835  ;;  %v1681_v19 = vadd.f32 1e-12, %v1677_v17  ;;  %1960 = vmatpush.bf16.msrb.mxu0 %v2650_v47 }
 0x5ca   : > { %v1683_v14 = vmul.f32 %v2836_v18, %v1680_v11  ;;  %vm1689_vm13 = vweird.f32 %v2836_v18  ;;  %1978 = vmatpush.bf16.msra.mxu1 %v2654_v54 }
 0x5cb   : > { %2837 = vrsqrt.f32 %v1681_v19  ;;  %vm1690_vm15 = vmor %vm1688_vm14, %vm1689_vm13  ;;  %vm1698_vm1 = vweird.f32 %v1681_v19 }
 0x5cc   : > { %v1684_v20 = vmul.f32 %v2836_v18, %v1683_v14 }
 0x5cd   : > { %1961 = vmatpush.bf16.msrb.mxu0 %v2649_v49 }
 0x5ce   : > { %v1685_v21 = vmul.f32 0.5, %v1684_v20  ;;  %1979 = vmatpush.bf16.msra.mxu1 %v2653_v57 }
 0x5d0   : > { %v1686_v22 = vsub.f32 1.5, %v1685_v21 }
 0x5d1   : > { %v2838_v23 = vpop.eup %2837  ;;  %1962 = vmatpush.bf16.msrb.mxu0 %v2648_v8 }
 0x5d2   : > { %v1687_v24 = vmul.f32 %v2836_v18, %v1686_v22  ;;  %v1693_v25 = vmul.f32 %v2838_v23, %v1681_v19  ;;  %vm1699_vm0 = vweird.f32 %v2838_v23  ;;  %1980 = vmatpush.bf16.msra.mxu1 %v2652_v0 }
 0x5d3   : > { %vm1700_vm2 = vmor %vm1698_vm1, %vm1699_vm0 }
 0x5d4   : > { %v1694_v26 = vmul.f32 %v2838_v23, %v1693_v25  ;;  %v1691_v27 = vsel %vm1690_vm15, %v2836_v18, %v1687_v24 }
 0x5d5   : > { %v1702_v31 = vmul.f32 %v1691_v27, %v1678_v29  ;;  %1963 = vmatpush.bf16.msrb.mxu0 %v2647_v51 }
 0x5d6   : > { %v1695_v28 = vmul.f32 0.5, %v1694_v26 }
 0x5d7   : > { %v1705_v37 = vmul.f32 %v1704_v32, %v1702_v31 }
 0x5d8   : > { %v1696_v30 = vsub.f32 1.5, %v1695_v28 }
 0x5d9   : > { %v3500_v41 = vadd.f32 %v1707_v4, %v1705_v37  ;;  %1964 = vmatpush.bf16.msrb.mxu0 %v2646_v53 }
 0x5da   : > { %v1697_v33 = vmul.f32 %v2838_v23, %v1696_v30 }
 0x5dc   : > { %v1701_v35 = vsel %vm1700_vm2, %v2838_v23, %v1697_v33 }
 0x5dd   : > { %v1703_v36 = vmul.f32 %v1701_v35, %v1679_v34  ;;  %1965 = vmatpush.bf16.msrb.mxu0 %v2645_v56 }
 0x5df   : > { %v1706_v38 = vmul.f32 %v1704_v32, %v1703_v36 }
 0x5e1   : > { %v3502_v42 = vadd.f32 %v1707_v4, %v1706_v38  ;;  %1966 = vmatpush.bf16.msrb.mxu0 %v2644_v62 }
 0x5e3   : > { %v1710_v44 = vpack.c.bf16 %v3502_v42, %v3500_v41 }
 0x5e5   : > { %1804 = vmatmul.bf16.vlgmr.msrb.gmra.mxu2 %v1710_v44  ;;  %1818 = vmatmul.bf16.vlgmr.msra.gmra.mxu3 %v1710_v44 }
 0x668   : > { %v1805_v60 = vpop.f32.mrf.mxu2  ;;  %v1819_v61 = vpop.f32.mrf.mxu3 }
 0x669   : > { %v1806_v1 = vadd.f32 %v1805_v60, %v1712_v58  ;;  %v1820_v2 = vadd.f32 %v1819_v61, %v1713_v59 }
 0x66b   : > { %v1824_v5 = vmul.f32 %v1806_v1, %v1806_v1  ;;  %v1825_v6 = vmul.f32 %v1820_v2, %v1820_v2 }
 0x66d   : > { %v1828_v43 = vmul.f32 %v1824_v5, %v1806_v1  ;;  %v1829_v39 = vmul.f32 %v1825_v6, %v1820_v2 }
 0x66f   : > { %v1832_v9 = vmul.f32 0.044715, %v1828_v43  ;;  %v1833_v10 = vmul.f32 0.044715, %v1829_v39 }
 0x670   : > { %v1807_v11 = vpop.f32.mrf.mxu2  ;;  %v1821_v12 = vpop.f32.mrf.mxu3 }
 0x671   : > { %v1836_v13 = vadd.f32 %v1832_v9, %v1806_v1  ;;  %v1837_v15 = vadd.f32 %v1833_v10, %v1820_v2  ;;  %v1808_v40 = vadd.f32 %v1807_v11, %v1712_v58  ;;  %v1822_v16 = vadd.f32 %v1821_v12, %v1713_v59 }
 0x673   : > { %v1840_v17 = vmul.f32 0.7978846, %v1836_v13  ;;  %v1826_v18 = vmul.f32 %v1808_v40, %v1808_v40  ;;  %v1827_v14 = vmul.f32 %v1822_v16, %v1822_v16  ;;  %v1841_v19 = vmul.f32 0.7978846, %v1837_v15 }
 0x675   : > { %v1830_v20 = vmul.f32 %v1826_v18, %v1808_v40  ;;  %v1831_v21 = vmul.f32 %v1827_v14, %v1822_v16  ;;  %2839 = vtanh.f32 %v1840_v17 }
 0x676   : > { %2841 = vtanh.f32 %v1841_v19 }
 0x677   : > { %v1834_v22 = vmul.f32 0.044715, %v1830_v20  ;;  %v1835_v23 = vmul.f32 0.044715, %v1831_v21 }
 0x679   : > { %v1838_v24 = vadd.f32 %v1834_v22, %v1808_v40  ;;  %v1839_v25 = vadd.f32 %v1835_v23, %v1822_v16 }
 0x67b   : > { %v1842_v26 = vmul.f32 0.7978846, %v1838_v24  ;;  %v1843_v27 = vmul.f32 0.7978846, %v1839_v25  ;;  %v2840_v28 = vpop.eup %2839  ;;  %v2035_v24 = vperm.slane %v3443_v63, 4 }
 0x67c   : > { %v2842_v29 = vpop.eup %2841  ;;  %v1848_v30 = vadd.f32 1.0, %v2840_v28  ;;  %v2038_v28 = vperm.slane %v3443_v63, 5 }
 0x67d   : > { %2843 = vtanh.f32 %v1842_v26  ;;  %v1849_v31 = vadd.f32 1.0, %v2842_v29 }
 0x67e   : > { %2845 = vtanh.f32 %v1843_v27  ;;  %v1852_v34 = vmul.f32 0.5, %v1848_v30 }
 0x67f   : > { %v1853_v36 = vmul.f32 0.5, %v1849_v31 }
 0x680   : > { %v1856_v44 = vmul.f32 %v1852_v34, %v1806_v1 }
 0x681   : > { %v1857_v45 = vmul.f32 %v1853_v36, %v1820_v2 }
 0x683   : > { %v2844_v32 = vpop.eup %2843 }
 0x684   : > { %v2846_v33 = vpop.eup %2845  ;;  %v1850_v35 = vadd.f32 1.0, %v2844_v32 }
 0x685   : > { %v1851_v37 = vadd.f32 1.0, %v2846_v33 }
 0x686   : > { %v1854_v4 = vmul.f32 0.5, %v1850_v35 }
 0x687   : > { %v1855_v38 = vmul.f32 0.5, %v1851_v37 }
 0x688   : > { %v1858_v7 = vmul.f32 %v1854_v4, %v1808_v40 }
 0x689   : > { %v1859_v47 = vmul.f32 %v1855_v38, %v1822_v16 }
 0x68a   : > { %v1860_v48 = vpack.c.bf16 %v1858_v7, %v1856_v44 }
 0x68b   : > { %v1861_v49 = vpack.c.bf16 %v1859_v47, %v1857_v45 }
 0x68c   : > { %1967 = vmatmul.bf16.vlgmr.msrb.gmra.mxu0 %v1860_v48 }
 0x68d   : > { %1981 = vmatmul.bf16.vlgmr.msra.gmra.mxu1 %v1861_v49 }
 0x709   : > { %v1968_v8 = vpop.f32.mrf.mxu0 }
 0x70a   : > { %v1969_v50 = vadd.f32 %v1968_v8, %v1862_v3  ;;  %v1982_v51 = vpop.f32.mrf.mxu1 }
 0x70c   : > { %v1983_v52 = vadd.f32 %v1982_v51, %v1969_v50 }
 0x70e   : > { %v1987_v53 = vadd.f32 %v1983_v52, %v3500_v41 }
 0x710   : > { %1989 = vadd.xlane.f32.xlu2 %v1987_v53  ;;  %v1995_v59 = vmul.f32 %v1987_v53, %v1987_v53 }
 0x711   : > { %v1970_v54 = vpop.f32.mrf.mxu0 }
 0x712   : > { %v1971_v55 = vadd.f32 %v1970_v54, %v1862_v3  ;;  %v1984_v56 = vpop.f32.mrf.mxu1 }
 0x714   : > { %v1985_v57 = vadd.f32 %v1984_v56, %v1971_v55 }
 0x716   : > { %v1988_v58 = vadd.f32 %v1985_v57, %v3502_v42 }
 0x718   : > { %1991 = vadd.xlane.f32.xlu0 %v1988_v58  ;;  %1997 = vadd.xlane.f32.xlu2 %v1995_v59  ;;  %v1996_v60 = vmul.f32 %v1988_v58, %v1988_v58 }
 0x71a   : > { %1999 = vadd.xlane.f32.xlu1 %v1996_v60 }
 0x783   : > { %v1990_v61 = vpop.xlane.xlu2 %1989 }
 0x784   : > { %v1993_v62 = vmul.f32 %v1990_v61, %v3478_v46 }
 0x786   : > { %v2003_v2 = vmul.f32 %v1993_v62, %v1993_v62  ;;  %v2009_v23 = vsub.f32 %v1987_v53, %v1993_v62 }
 0x78b   : > { %v1992_v0 = vpop.xlane.xlu0 %1991  ;;  %v1998_v1 = vpop.xlane.xlu2 %1997 }
 0x78c   : > { %v1994_v41 = vmul.f32 %v1992_v0, %v3478_v46  ;;  %v2001_v5 = vmul.f32 %v1998_v1, %v3478_v46 }
 0x78d   : > { %v2000_v6 = vpop.xlane.xlu1 %1999 }
 0x78e   : > { %v2004_v43 = vmul.f32 %v1994_v41, %v1994_v41  ;;  %v2005_v39 = vsub.f32 %v2001_v5, %v2003_v2  ;;  %v2002_v42 = vmul.f32 %v2000_v6, %v3478_v46  ;;  %v2010_v27 = vsub.f32 %v1988_v58, %v1994_v41 }
 0x790   : > { %v2007_v9 = vmax.f32 %v2005_v39, 0.0  ;;  %v2006_v10 = vsub.f32 %v2002_v42, %v2004_v43 }
 0x792   : > { %v2011_v11 = vadd.f32 1e-12, %v2007_v9  ;;  %v2008_v12 = vmax.f32 %v2006_v10, 0.0 }
 0x794   : > { %2847 = vrsqrt.f32 %v2011_v11  ;;  %v2012_v13 = vadd.f32 1e-12, %v2008_v12  ;;  %vm2019_vm4 = vweird.f32 %v2011_v11 }
 0x796   : > { %2849 = vrsqrt.f32 %v2012_v13  ;;  %vm2029_vm7 = vweird.f32 %v2012_v13 }
 0x79a   : > { %v2848_v15 = vpop.eup %2847 }
 0x79b   : > { %v2014_v40 = vmul.f32 %v2848_v15, %v2011_v11  ;;  %vm2020_vm3 = vweird.f32 %v2848_v15 }
 0x79c   : > { %v2850_v16 = vpop.eup %2849  ;;  %vm2021_vm6 = vmor %vm2019_vm4, %vm2020_vm3 }
 0x79d   : > { %v2015_v17 = vmul.f32 %v2848_v15, %v2014_v40  ;;  %v2024_v18 = vmul.f32 %v2850_v16, %v2012_v13  ;;  %vm2030_vm5 = vweird.f32 %v2850_v16 }
 0x79e   : > { %vm2031_vm9 = vmor %vm2029_vm7, %vm2030_vm5 }
 0x79f   : > { %v2016_v14 = vmul.f32 0.5, %v2015_v17  ;;  %v2025_v19 = vmul.f32 %v2850_v16, %v2024_v18 }
 0x7a1   : > { %v2017_v20 = vsub.f32 1.5, %v2016_v14  ;;  %v2026_v21 = vmul.f32 0.5, %v2025_v19 }
 0x7a3   : > { %v2018_v22 = vmul.f32 %v2848_v15, %v2017_v20  ;;  %v2027_v46 = vsub.f32 1.5, %v2026_v21 }
 0x7a5   : > { %v2022_v25 = vsel %vm2021_vm6, %v2848_v15, %v2018_v22  ;;  %v2028_v26 = vmul.f32 %v2850_v16, %v2027_v46 }
 0x7a6   : > { %v2033_v29 = vmul.f32 %v2022_v25, %v2009_v23 }
 0x7a7   : > { %v2032_v30 = vsel %vm2031_vm9, %v2850_v16, %v2028_v26 }
 0x7a8   : > { %v2036_v31 = vmul.f32 %v2035_v24, %v2033_v29  ;;  %v2034_v32 = vmul.f32 %v2032_v30, %v2010_v27 }
 0x7aa   : > { %v2039_v33 = vadd.f32 %v2038_v28, %v2036_v31  ;;  %v2037_v34 = vmul.f32 %v2035_v24, %v2034_v32  ;;  %2046 = sbr.rel (%p2588_p5) target bundleno = 2096 (0x830), region = 121 }
 0x7ac   : > { %2041 = vst [vmem:[#allocation2] sm:$0xff] %v2039_v33  ;;  %v2040_v35 = vadd.f32 %v2038_v28, %v2037_v34 }
 0x7ae   : > { %2042 = vst [vmem:[#allocation2 + $0x8] sm:$0xff] %v2040_v35 }
 0x7af   : > { %2067 = vmatpush.msra.mxu0 %v2039_v33  ;;  %v2047_v36 = vld [vmem:[%s3204_s16] sm:$0x1]  ;;  %2090 = vmatpush.msra.mxu1 %v2040_v35  ;;  %v2048_v63 = vld [vmem:[%s3204_s16 + $0x1] sm:$0x1] }
 0x7b0   : > { %2589 = vmatmul.msk.f32.vlgmr.msra.gmra.mxu0 %vm1303_vm8, %v2047_v36  ;;  %2590 = vmatmul.msk.f32.vlgmr.msra.gmra.mxu1 %vm1303_vm8, %v2048_v63 }
 0x82d   : > { %v2069_v37 = vpop.f32.mrf.mxu0  ;;  %v2092_v4 = vpop.f32.mrf.mxu1 }
 0x82e   : > { %2095 = vst [vmem:[%s3237_s7] sm:$0x1] %v2069_v37 }
 0x82f   : > { %2096 = vst [vmem:[%s3237_s7 + $0x1] sm:$0x1] %v2092_v4 }
 0x830 PF: > { %s27_s26 = sadd.s32 1, %s2993_s26   ;;  %s3622_s0 = sld [smem:[#allocation10_spill]] }
 0x831   : > { %p24_p6 = scmp.ge.s32.totalorder %s27_s26, 6   ;;  %s3623_s19 = sld [smem:[#allocation16_spill]] }
 0x832   : > { %s3624_s20 = sld [smem:[#allocation11_spill]]  ;;  %s3630_s17 = smov %s2961_s18 }
 0x833   : > { %s3625_s21 = sld [smem:[#allocation17_spill]]  ;;  %26 = sbr.rel (!%p24_p6) target bundleno = 21 (0x15), region = 195 }
 0x834   : > { %s3626_s22 = sld [smem:[#allocation12_spill]] }
 0x835   : > { %s3627_s23 = sld [smem:[#allocation13_spill]] }
 0x836   : > { %s3628_s24 = sld [smem:[#allocation14_spill]]  ;;  %s3631_s18 = smov %s3622_s0 }
 0x837   : > { %s3629_s25 = sld [smem:[#allocation15_spill]] }
 0x838   :  { %2117 = vsyncpa [#allocation5], 1 }
 0x839   :  { %2119 = vsyncpa [#allocation5 + $0x1], 1 }
 0x83a   :  { %2120 = vsyncpa [#allocation7], 1 }
 0x83b   :  { %2122 = vsyncpa [#allocation7 + $0x1], 1 }

</bundles_post_ra>
